<compile_context>
chip_gen: v5e
topology: v5e:2x2
jax: 0.10.0
libtpu: 0.0.40
codegen_flags: <defaults>
</compile_context>

<pallas_src>
import functools
import math

import jax
import jax.numpy as jnp
import numpy as np
from jax import lax
from jax.experimental import pallas as pl
from jax.experimental.pallas import tpu as pltpu


# ------------------------------ Fused kernel --------------------------------

def _fused_self_attention_kernel(x_ref, mask_ref, wq_ref, wfc_ref, bfc_ref,
                                 o_ref, qh_ref, a_ref, *, heads, head_dim):
    # Shapes (per grid step = one batch):
    #   x_ref   : (1, T, K)      queries for this batch
    #   mask_ref: (1, T, T)      shared mask (int32)
    #   wq_ref  : (K, K)         W_q, stored (in, out)
    #   wfc_ref : (K, K)         W_fc, stored (in, out)
    #   bfc_ref : (1, K)         fc bias
    #   o_ref   : (1, T, K)      output
    #   qh_ref  : (H, T, Dh) f32 VMEM scratch (head-major q, reused for attn)
    #   a_ref   : (T, K)     f32 VMEM scratch (merged heads, fc input)
    T = x_ref.shape[1]
    K = x_ref.shape[2]
    H, Dh = heads, head_dim
    inv_sqrt_dh = jnp.float32(1.0 / math.sqrt(Dh))

    x = x_ref[0]                                                    # (T, K)

    # ---- q projection on the MXU (bf16 operands, f32 accumulation) ----
    q = jnp.dot(x.astype(jnp.bfloat16), wq_ref[...].astype(jnp.bfloat16),
                preferred_element_type=jnp.float32)                 # (T, K)

    # ---- quirky head split: (T, K) -> (H, T, Dh), exactly torch's raw
    #      row-major reshape(B,T,H,Dh).reshape(B*H,T,Dh) restricted to one
    #      batch.  Done with static chunk stores through VMEM scratch.
    #      (Dh divides K, so a Dh-chunk never crosses a row of q.)
    # TODO(synk): for realistic T this unrolled scatter should be replaced by
    # a head-major projection layout / flash-style streaming over tokens.
    for h in range(H):
        for t in range(T):
            flat = (h * T + t) * Dh
            r, c = flat // K, flat % K
            qh_ref[h, t:t + 1, :] = q[r:r + 1, c:c + Dh]
    qh = qh_ref[...]                                                # (H, T, Dh) f32

    # ---- scores: batched over heads, contracting the LAST dims (no q.T) ----
    kv = qh.astype(jnp.bfloat16)               # reference quirk: K = V = Q
    q_scaled = (qh * inv_sqrt_dh).astype(jnp.bfloat16)
    s = lax.dot_general(q_scaled, kv,
                        dimension_numbers=(((2,), (2,)), ((0,), (0,))),
                        preferred_element_type=jnp.float32)         # (H, T, T)

    # ---- mask + softmax (all in f32; reciprocal on the EUP) ----
    s = jnp.where(mask_ref[0][None, :, :] == 0, jnp.float32(-1e20), s)
    m = jnp.max(s, axis=-1, keepdims=True)
    p = jnp.exp(s - m)
    l = jnp.sum(p, axis=-1, keepdims=True)
    p = p * pl.reciprocal(l, approx=True)

    # ---- attention output: (H, T, T) @ (H, T, Dh) -> (H, T, Dh) ----
    attn = lax.dot_general(p.astype(jnp.bfloat16), kv,
                           dimension_numbers=(((2,), (1,)), ((0,), (0,))),
                           preferred_element_type=jnp.float32)      # (H, T, Dh)

    # ---- inverse quirky reshape: (H, T, Dh) -> (T, K) through VMEM ----
    qh_ref[...] = attn                          # reuse scratch to read chunks
    for h in range(H):
        for t in range(T):
            flat = (h * T + t) * Dh
            r, c = flat // K, flat % K
            a_ref[r:r + 1, c:c + Dh] = qh_ref[h, t:t + 1, :]
    a = a_ref[...]                                                  # (T, K) f32

    # ---- fc + bias, lane-dense (T, K) store ----
    out = jnp.dot(a.astype(jnp.bfloat16), wfc_ref[...].astype(jnp.bfloat16),
                  preferred_element_type=jnp.float32) + bfc_ref[...]
    o_ref[0] = out.astype(o_ref.dtype)


# -------------------------------- Wrapper ------------------------------------

def self_attention_forward(params, queries, keys, vals, mask, *, heads):
    """Mirrors SelfAttention.forward (including its reshape / K=V=Q quirks).

    `keys` / `vals` are accepted for interface fidelity but unused: the
    reference forward overwrites their projections with the projected queries.
    """
    del keys, vals  # dead code in the reference forward
    wq_t, wk_t, wv_t, wfc_t, bfc = params
    del wk_t, wv_t  # dead code in the reference forward
    B, T, K = queries.shape
    H = heads
    Dh = K // H
    assert Dh * H == K

    mask3 = jnp.asarray(mask, jnp.int32)
    if mask3.ndim == 2:
        mask3 = mask3[None]
    mask3 = mask3[:1]                       # (1, T, T), shared — never broadcast in HBM

    kernel = functools.partial(_fused_self_attention_kernel, heads=H, head_dim=Dh)

    return pl.pallas_call(
        kernel,
        out_shape=jax.ShapeDtypeStruct((B, T, K), queries.dtype),
        grid=(B,),
        in_specs=[
            pl.BlockSpec((1, T, K), lambda b: (b, 0, 0)),   # per-batch activations
            pl.BlockSpec((1, T, T), lambda b: (0, 0, 0)),   # mask (shared block)
            pl.BlockSpec((K, K), lambda b: (0, 0)),         # W_q  (in, out)
            pl.BlockSpec((K, K), lambda b: (0, 0)),         # W_fc (in, out)
            pl.BlockSpec((1, K), lambda b: (0, 0)),         # fc bias
        ],
        out_specs=pl.BlockSpec((1, T, K), lambda b: (b, 0, 0)),
        scratch_shapes=[
            pltpu.VMEM((H, T, Dh), jnp.float32),            # head-major q / attn
            pltpu.VMEM((T, K), jnp.float32),                # merged heads (fc input)
        ],
        compiler_params=pltpu.CompilerParams(
            dimension_semantics=("parallel",),              # 2 TCs on v7x
        ),
    )(queries, mask3, wq_t, wfc_t, bfc)


# --------------------------- Pure-JAX reference ------------------------------

def reference_forward(params, queries, keys, vals, mask, *, heads):
    wq_t, wk_t, wv_t, wfc_t, bfc = params
    B, T, K = queries.shape
    H = heads
    Dh = K // H
    q = queries.reshape(B * T, K) @ wq_t
    qh = q.reshape(B * H, T, Dh)                     # raw row-major reshape (quirk)
    s = jnp.einsum("btd,bsd->bts", qh, qh) / math.sqrt(Dh)
    s = jnp.where(jnp.broadcast_to(mask, s.shape) == 0, -1e20, s)
    p = jax.nn.softmax(s, axis=-1)
    o = jnp.einsum("bts,bsd->btd", p, qh)
    x = o.reshape(B * T, K) @ wfc_t + bfc[0]
    return x.reshape(B, T, K)


# ---------------------------------- Main -------------------------------------

if __name__ == "__main__":
    B, T, K, HEADS = 2, 8, 32, 4  # embedding_size=32, heads=4 -> head_dim=8
    Dh = K // HEADS

    key = jax.random.PRNGKey(0)
    ks = jax.random.split(key, 8)

    # nn.Linear default init: U(-1/sqrt(in), 1/sqrt(in)); weights stored as (in, out)
    bound = 1.0 / math.sqrt(K)
    wq_t = jax.random.uniform(ks[0], (K, K), jnp.float32, -bound, bound)
    wk_t = jax.random.uniform(ks[1], (K, K), jnp.float32, -bound, bound)
    wv_t = jax.random.uniform(ks[2], (K, K), jnp.float32, -bound, bound)
    wfc_t = jax.random.uniform(ks[3], (K, K), jnp.float32, -bound, bound)
    bfc = jax.random.uniform(ks[4], (1, K), jnp.float32, -bound, bound)
    params = (wq_t, wk_t, wv_t, wfc_t, bfc)

    queries = jax.random.normal(ks[5], (B, T, K), jnp.float32)
    keys_in = jax.random.normal(ks[6], (B, T, K), jnp.float32)
    vals_in = jax.random.normal(ks[7], (B, T, K), jnp.float32)

    # causal mask, broadcastable to (B*heads, T, T)
    mask = jnp.tril(jnp.ones((T, T), jnp.int32))[None, :, :]

    out = self_attention_forward(params, queries, keys_in, vals_in, mask, heads=HEADS)
    out = jax.block_until_ready(out)

    ref = reference_forward(params, queries, keys_in, vals_in, mask, heads=HEADS)
    # bf16 MXU operands + approx reciprocal => ~1e-3..1e-2 level differences.
    np.testing.assert_allclose(np.asarray(out), np.asarray(ref), rtol=2e-2, atol=2e-2)

    print("KERNEL_OK")
</pallas_src>

<mosaic_0001>
module attributes {stable_mosaic.version = 11 : i64} {
  func.func @_fused_self_attention_kernel(%arg0: i32, %arg1: memref<1x8x32xf32, #tpu.memory_space<vmem>>, %arg2: memref<1x8x8xi32, #tpu.memory_space<vmem>>, %arg3: memref<32x32xf32, #tpu.memory_space<vmem>>, %arg4: memref<32x32xf32, #tpu.memory_space<vmem>>, %arg5: memref<1x32xf32, #tpu.memory_space<vmem>>, %arg6: memref<1x8x32xf32, #tpu.memory_space<vmem>>, %arg7: memref<4x8x8xf32, #tpu.memory_space<vmem>>, %arg8: memref<8x32xf32, #tpu.memory_space<vmem>>) attributes {dimension_semantics = [#tpu.dimension_semantics<parallel>], iteration_bounds = array<i64: 2>, scalar_prefetch = 0 : i64, scratch_operands = 2 : i64, tpu.core_type = #tpu.core_type<tc>, window_params = [{transform_indices = @transform_0, window_bounds = array<i64: 1, 8, 32>}, {pipeline_mode = #tpu.pipeline_mode<synchronous>, transform_indices = @transform_1, window_bounds = array<i64: 1, 8, 8>}, {pipeline_mode = #tpu.pipeline_mode<synchronous>, transform_indices = @transform_2, window_bounds = array<i64: 32, 32>}, {pipeline_mode = #tpu.pipeline_mode<synchronous>, transform_indices = @transform_3, window_bounds = array<i64: 32, 32>}, {pipeline_mode = #tpu.pipeline_mode<synchronous>, transform_indices = @transform_4, window_bounds = array<i64: 1, 32>}, {transform_indices = @transform_5, window_bounds = array<i64: 1, 8, 32>}]} {
    %c0 = arith.constant 0 : index
    %c0_0 = arith.constant 0 : index
    %c0_1 = arith.constant 0 : index
    %0 = vector.load %arg1[%c0, %c0_0, %c0_1] : memref<1x8x32xf32, #tpu.memory_space<vmem>>, vector<1x8x32xf32>
    %1 = vector.shape_cast %0 : vector<1x8x32xf32> to vector<8x32xf32>
    %2 = arith.truncf %1 : vector<8x32xf32> to vector<8x32xbf16>
    %c0_2 = arith.constant 0 : index
    %c0_3 = arith.constant 0 : index
    %3 = vector.load %arg3[%c0_2, %c0_3] : memref<32x32xf32, #tpu.memory_space<vmem>>, vector<32x32xf32>
    %4 = arith.truncf %3 : vector<32x32xf32> to vector<32x32xbf16>
    %cst = arith.constant dense<0.000000e+00> : vector<8x32xf32>
    %5 = tpu.matmul %2, %4, %cst {dimension_numbers = #tpu.dot_dimension_numbers<[1], [0], [0], [1], [0, 0, 1, 1], [], []>} : vector<8x32xbf16>, vector<32x32xbf16>, vector<8x32xf32> -> vector<8x32xf32>
    %6 = vector.extract_strided_slice %5 {offsets = [0, 0], sizes = [1, 8], strides = [1, 1]} : vector<8x32xf32> to vector<1x8xf32>
    %c0_4 = arith.constant 0 : index
    %c0_5 = arith.constant 0 : index
    %c0_6 = arith.constant 0 : index
    %7 = vector.load %arg7[%c0_4, %c0_5, %c0_6] : memref<4x8x8xf32, #tpu.memory_space<vmem>>, vector<1x1x8xf32>
    %8 = vector.shape_cast %7 : vector<1x1x8xf32> to vector<1x8xf32>
    %9 = vector.shape_cast %6 : vector<1x8xf32> to vector<1x1x8xf32>
    tpu.vector_store %arg7[%c0_4, %c0_5, %c0_6], %9 {strides = array<i32>} : memref<4x8x8xf32, #tpu.memory_space<vmem>>, vector<1x1x8xf32>,
    %10 = vector.extract_strided_slice %5 {offsets = [0, 8], sizes = [1, 8], strides = [1, 1]} : vector<8x32xf32> to vector<1x8xf32>
    %c0_7 = arith.constant 0 : index
    %c1 = arith.constant 1 : index
    %c0_8 = arith.constant 0 : index
    %11 = vector.load %arg7[%c0_7, %c1, %c0_8] : memref<4x8x8xf32, #tpu.memory_space<vmem>>, vector<1x1x8xf32>
    %12 = vector.shape_cast %11 : vector<1x1x8xf32> to vector<1x8xf32>
    %13 = vector.shape_cast %10 : vector<1x8xf32> to vector<1x1x8xf32>
    tpu.vector_store %arg7[%c0_7, %c1, %c0_8], %13 {strides = array<i32>} : memref<4x8x8xf32, #tpu.memory_space<vmem>>, vector<1x1x8xf32>,
    %14 = vector.extract_strided_slice %5 {offsets = [0, 16], sizes = [1, 8], strides = [1, 1]} : vector<8x32xf32> to vector<1x8xf32>
    %c0_9 = arith.constant 0 : index
    %c2 = arith.constant 2 : index
    %c0_10 = arith.constant 0 : index
    %15 = vector.load %arg7[%c0_9, %c2, %c0_10] : memref<4x8x8xf32, #tpu.memory_space<vmem>>, vector<1x1x8xf32>
    %16 = vector.shape_cast %15 : vector<1x1x8xf32> to vector<1x8xf32>
    %17 = vector.shape_cast %14 : vector<1x8xf32> to vector<1x1x8xf32>
    tpu.vector_store %arg7[%c0_9, %c2, %c0_10], %17 {strides = array<i32>} : memref<4x8x8xf32, #tpu.memory_space<vmem>>, vector<1x1x8xf32>,
    %18 = vector.extract_strided_slice %5 {offsets = [0, 24], sizes = [1, 8], strides = [1, 1]} : vector<8x32xf32> to vector<1x8xf32>
    %c0_11 = arith.constant 0 : index
    %c3 = arith.constant 3 : index
    %c0_12 = arith.constant 0 : index
    %19 = vector.load %arg7[%c0_11, %c3, %c0_12] : memref<4x8x8xf32, #tpu.memory_space<vmem>>, vector<1x1x8xf32>
    %20 = vector.shape_cast %19 : vector<1x1x8xf32> to vector<1x8xf32>
    %21 = vector.shape_cast %18 : vector<1x8xf32> to vector<1x1x8xf32>
    tpu.vector_store %arg7[%c0_11, %c3, %c0_12], %21 {strides = array<i32>} : memref<4x8x8xf32, #tpu.memory_space<vmem>>, vector<1x1x8xf32>,
    %22 = vector.extract_strided_slice %5 {offsets = [1, 0], sizes = [1, 8], strides = [1, 1]} : vector<8x32xf32> to vector<1x8xf32>
    %c0_13 = arith.constant 0 : index
    %c4 = arith.constant 4 : index
    %c0_14 = arith.constant 0 : index
    %23 = vector.load %arg7[%c0_13, %c4, %c0_14] : memref<4x8x8xf32, #tpu.memory_space<vmem>>, vector<1x1x8xf32>
    %24 = vector.shape_cast %23 : vector<1x1x8xf32> to vector<1x8xf32>
    %25 = vector.shape_cast %22 : vector<1x8xf32> to vector<1x1x8xf32>
    tpu.vector_store %arg7[%c0_13, %c4, %c0_14], %25 {strides = array<i32>} : memref<4x8x8xf32, #tpu.memory_space<vmem>>, vector<1x1x8xf32>,
    %26 = vector.extract_strided_slice %5 {offsets = [1, 8], sizes = [1, 8], strides = [1, 1]} : vector<8x32xf32> to vector<1x8xf32>
    %c0_15 = arith.constant 0 : index
    %c5 = arith.constant 5 : index
    %c0_16 = arith.constant 0 : index
    %27 = vector.load %arg7[%c0_15, %c5, %c0_16] : memref<4x8x8xf32, #tpu.memory_space<vmem>>, vector<1x1x8xf32>
    %28 = vector.shape_cast %27 : vector<1x1x8xf32> to vector<1x8xf32>
    %29 = vector.shape_cast %26 : vector<1x8xf32> to vector<1x1x8xf32>
    tpu.vector_store %arg7[%c0_15, %c5, %c0_16], %29 {strides = array<i32>} : memref<4x8x8xf32, #tpu.memory_space<vmem>>, vector<1x1x8xf32>,
    %30 = vector.extract_strided_slice %5 {offsets = [1, 16], sizes = [1, 8], strides = [1, 1]} : vector<8x32xf32> to vector<1x8xf32>
    %c0_17 = arith.constant 0 : index
    %c6 = arith.constant 6 : index
    %c0_18 = arith.constant 0 : index
    %31 = vector.load %arg7[%c0_17, %c6, %c0_18] : memref<4x8x8xf32, #tpu.memory_space<vmem>>, vector<1x1x8xf32>
    %32 = vector.shape_cast %31 : vector<1x1x8xf32> to vector<1x8xf32>
    %33 = vector.shape_cast %30 : vector<1x8xf32> to vector<1x1x8xf32>
    tpu.vector_store %arg7[%c0_17, %c6, %c0_18], %33 {strides = array<i32>} : memref<4x8x8xf32, #tpu.memory_space<vmem>>, vector<1x1x8xf32>,
    %34 = vector.extract_strided_slice %5 {offsets = [1, 24], sizes = [1, 8], strides = [1, 1]} : vector<8x32xf32> to vector<1x8xf32>
    %c0_19 = arith.constant 0 : index
    %c7 = arith.constant 7 : index
    %c0_20 = arith.constant 0 : index
    %35 = vector.load %arg7[%c0_19, %c7, %c0_20] : memref<4x8x8xf32, #tpu.memory_space<vmem>>, vector<1x1x8xf32>
    %36 = vector.shape_cast %35 : vector<1x1x8xf32> to vector<1x8xf32>
    %37 = vector.shape_cast %34 : vector<1x8xf32> to vector<1x1x8xf32>
    tpu.vector_store %arg7[%c0_19, %c7, %c0_20], %37 {strides = array<i32>} : memref<4x8x8xf32, #tpu.memory_space<vmem>>, vector<1x1x8xf32>,
    %38 = vector.extract_strided_slice %5 {offsets = [2, 0], sizes = [1, 8], strides = [1, 1]} : vector<8x32xf32> to vector<1x8xf32>
    %c1_21 = arith.constant 1 : index
    %c0_22 = arith.constant 0 : index
    %c0_23 = arith.constant 0 : index
    %39 = vector.load %arg7[%c1_21, %c0_22, %c0_23] : memref<4x8x8xf32, #tpu.memory_space<vmem>>, vector<1x1x8xf32>
    %40 = vector.shape_cast %39 : vector<1x1x8xf32> to vector<1x8xf32>
    %41 = vector.shape_cast %38 : vector<1x8xf32> to vector<1x1x8xf32>
    tpu.vector_store %arg7[%c1_21, %c0_22, %c0_23], %41 {strides = array<i32>} : memref<4x8x8xf32, #tpu.memory_space<vmem>>, vector<1x1x8xf32>,
    %42 = vector.extract_strided_slice %5 {offsets = [2, 8], sizes = [1, 8], strides = [1, 1]} : vector<8x32xf32> to vector<1x8xf32>
    %c1_24 = arith.constant 1 : index
    %c1_25 = arith.constant 1 : index
    %c0_26 = arith.constant 0 : index
    %43 = vector.load %arg7[%c1_24, %c1_25, %c0_26] : memref<4x8x8xf32, #tpu.memory_space<vmem>>, vector<1x1x8xf32>
    %44 = vector.shape_cast %43 : vector<1x1x8xf32> to vector<1x8xf32>
    %45 = vector.shape_cast %42 : vector<1x8xf32> to vector<1x1x8xf32>
    tpu.vector_store %arg7[%c1_24, %c1_25, %c0_26], %45 {strides = array<i32>} : memref<4x8x8xf32, #tpu.memory_space<vmem>>, vector<1x1x8xf32>,
    %46 = vector.extract_strided_slice %5 {offsets = [2, 16], sizes = [1, 8], strides = [1, 1]} : vector<8x32xf32> to vector<1x8xf32>
    %c1_27 = arith.constant 1 : index
    %c2_28 = arith.constant 2 : index
    %c0_29 = arith.constant 0 : index
    %47 = vector.load %arg7[%c1_27, %c2_28, %c0_29] : memref<4x8x8xf32, #tpu.memory_space<vmem>>, vector<1x1x8xf32>
    %48 = vector.shape_cast %47 : vector<1x1x8xf32> to vector<1x8xf32>
    %49 = vector.shape_cast %46 : vector<1x8xf32> to vector<1x1x8xf32>
    tpu.vector_store %arg7[%c1_27, %c2_28, %c0_29], %49 {strides = array<i32>} : memref<4x8x8xf32, #tpu.memory_space<vmem>>, vector<1x1x8xf32>,
    %50 = vector.extract_strided_slice %5 {offsets = [2, 24], sizes = [1, 8], strides = [1, 1]} : vector<8x32xf32> to vector<1x8xf32>
    %c1_30 = arith.constant 1 : index
    %c3_31 = arith.constant 3 : index
    %c0_32 = arith.constant 0 : index
    %51 = vector.load %arg7[%c1_30, %c3_31, %c0_32] : memref<4x8x8xf32, #tpu.memory_space<vmem>>, vector<1x1x8xf32>
    %52 = vector.shape_cast %51 : vector<1x1x8xf32> to vector<1x8xf32>
    %53 = vector.shape_cast %50 : vector<1x8xf32> to vector<1x1x8xf32>
    tpu.vector_store %arg7[%c1_30, %c3_31, %c0_32], %53 {strides = array<i32>} : memref<4x8x8xf32, #tpu.memory_space<vmem>>, vector<1x1x8xf32>,
    %54 = vector.extract_strided_slice %5 {offsets = [3, 0], sizes = [1, 8], strides = [1, 1]} : vector<8x32xf32> to vector<1x8xf32>
    %c1_33 = arith.constant 1 : index
    %c4_34 = arith.constant 4 : index
    %c0_35 = arith.constant 0 : index
    %55 = vector.load %arg7[%c1_33, %c4_34, %c0_35] : memref<4x8x8xf32, #tpu.memory_space<vmem>>, vector<1x1x8xf32>
    %56 = vector.shape_cast %55 : vector<1x1x8xf32> to vector<1x8xf32>
    %57 = vector.shape_cast %54 : vector<1x8xf32> to vector<1x1x8xf32>
    tpu.vector_store %arg7[%c1_33, %c4_34, %c0_35], %57 {strides = array<i32>} : memref<4x8x8xf32, #tpu.memory_space<vmem>>, vector<1x1x8xf32>,
    %58 = vector.extract_strided_slice %5 {offsets = [3, 8], sizes = [1, 8], strides = [1, 1]} : vector<8x32xf32> to vector<1x8xf32>
    %c1_36 = arith.constant 1 : index
    %c5_37 = arith.constant 5 : index
    %c0_38 = arith.constant 0 : index
    %59 = vector.load %arg7[%c1_36, %c5_37, %c0_38] : memref<4x8x8xf32, #tpu.memory_space<vmem>>, vector<1x1x8xf32>
    %60 = vector.shape_cast %59 : vector<1x1x8xf32> to vector<1x8xf32>
    %61 = vector.shape_cast %58 : vector<1x8xf32> to vector<1x1x8xf32>
    tpu.vector_store %arg7[%c1_36, %c5_37, %c0_38], %61 {strides = array<i32>} : memref<4x8x8xf32, #tpu.memory_space<vmem>>, vector<1x1x8xf32>,
    %62 = vector.extract_strided_slice %5 {offsets = [3, 16], sizes = [1, 8], strides = [1, 1]} : vector<8x32xf32> to vector<1x8xf32>
    %c1_39 = arith.constant 1 : index
    %c6_40 = arith.constant 6 : index
    %c0_41 = arith.constant 0 : index
    %63 = vector.load %arg7[%c1_39, %c6_40, %c0_41] : memref<4x8x8xf32, #tpu.memory_space<vmem>>, vector<1x1x8xf32>
    %64 = vector.shape_cast %63 : vector<1x1x8xf32> to vector<1x8xf32>
    %65 = vector.shape_cast %62 : vector<1x8xf32> to vector<1x1x8xf32>
    tpu.vector_store %arg7[%c1_39, %c6_40, %c0_41], %65 {strides = array<i32>} : memref<4x8x8xf32, #tpu.memory_space<vmem>>, vector<1x1x8xf32>,
    %66 = vector.extract_strided_slice %5 {offsets = [3, 24], sizes = [1, 8], strides = [1, 1]} : vector<8x32xf32> to vector<1x8xf32>
    %c1_42 = arith.constant 1 : index
    %c7_43 = arith.constant 7 : index
    %c0_44 = arith.constant 0 : index
    %67 = vector.load %arg7[%c1_42, %c7_43, %c0_44] : memref<4x8x8xf32, #tpu.memory_space<vmem>>, vector<1x1x8xf32>
    %68 = vector.shape_cast %67 : vector<1x1x8xf32> to vector<1x8xf32>
    %69 = vector.shape_cast %66 : vector<1x8xf32> to vector<1x1x8xf32>
    tpu.vector_store %arg7[%c1_42, %c7_43, %c0_44], %69 {strides = array<i32>} : memref<4x8x8xf32, #tpu.memory_space<vmem>>, vector<1x1x8xf32>,
    %70 = vector.extract_strided_slice %5 {offsets = [4, 0], sizes = [1, 8], strides = [1, 1]} : vector<8x32xf32> to vector<1x8xf32>
    %c2_45 = arith.constant 2 : index
    %c0_46 = arith.constant 0 : index
    %c0_47 = arith.constant 0 : index
    %71 = vector.load %arg7[%c2_45, %c0_46, %c0_47] : memref<4x8x8xf32, #tpu.memory_space<vmem>>, vector<1x1x8xf32>
    %72 = vector.shape_cast %71 : vector<1x1x8xf32> to vector<1x8xf32>
    %73 = vector.shape_cast %70 : vector<1x8xf32> to vector<1x1x8xf32>
    tpu.vector_store %arg7[%c2_45, %c0_46, %c0_47], %73 {strides = array<i32>} : memref<4x8x8xf32, #tpu.memory_space<vmem>>, vector<1x1x8xf32>,
    %74 = vector.extract_strided_slice %5 {offsets = [4, 8], sizes = [1, 8], strides = [1, 1]} : vector<8x32xf32> to vector<1x8xf32>
    %c2_48 = arith.constant 2 : index
    %c1_49 = arith.constant 1 : index
    %c0_50 = arith.constant 0 : index
    %75 = vector.load %arg7[%c2_48, %c1_49, %c0_50] : memref<4x8x8xf32, #tpu.memory_space<vmem>>, vector<1x1x8xf32>
    %76 = vector.shape_cast %75 : vector<1x1x8xf32> to vector<1x8xf32>
    %77 = vector.shape_cast %74 : vector<1x8xf32> to vector<1x1x8xf32>
    tpu.vector_store %arg7[%c2_48, %c1_49, %c0_50], %77 {strides = array<i32>} : memref<4x8x8xf32, #tpu.memory_space<vmem>>, vector<1x1x8xf32>,
    %78 = vector.extract_strided_slice %5 {offsets = [4, 16], sizes = [1, 8], strides = [1, 1]} : vector<8x32xf32> to vector<1x8xf32>
    %c2_51 = arith.constant 2 : index
    %c2_52 = arith.constant 2 : index
    %c0_53 = arith.constant 0 : index
    %79 = vector.load %arg7[%c2_51, %c2_52, %c0_53] : memref<4x8x8xf32, #tpu.memory_space<vmem>>, vector<1x1x8xf32>
    %80 = vector.shape_cast %79 : vector<1x1x8xf32> to vector<1x8xf32>
    %81 = vector.shape_cast %78 : vector<1x8xf32> to vector<1x1x8xf32>
    tpu.vector_store %arg7[%c2_51, %c2_52, %c0_53], %81 {strides = array<i32>} : memref<4x8x8xf32, #tpu.memory_space<vmem>>, vector<1x1x8xf32>,
    %82 = vector.extract_strided_slice %5 {offsets = [4, 24], sizes = [1, 8], strides = [1, 1]} : vector<8x32xf32> to vector<1x8xf32>
    %c2_54 = arith.constant 2 : index
    %c3_55 = arith.constant 3 : index
    %c0_56 = arith.constant 0 : index
    %83 = vector.load %arg7[%c2_54, %c3_55, %c0_56] : memref<4x8x8xf32, #tpu.memory_space<vmem>>, vector<1x1x8xf32>
    %84 = vector.shape_cast %83 : vector<1x1x8xf32> to vector<1x8xf32>
    %85 = vector.shape_cast %82 : vector<1x8xf32> to vector<1x1x8xf32>
    tpu.vector_store %arg7[%c2_54, %c3_55, %c0_56], %85 {strides = array<i32>} : memref<4x8x8xf32, #tpu.memory_space<vmem>>, vector<1x1x8xf32>,
    %86 = vector.extract_strided_slice %5 {offsets = [5, 0], sizes = [1, 8], strides = [1, 1]} : vector<8x32xf32> to vector<1x8xf32>
    %c2_57 = arith.constant 2 : index
    %c4_58 = arith.constant 4 : index
    %c0_59 = arith.constant 0 : index
    %87 = vector.load %arg7[%c2_57, %c4_58, %c0_59] : memref<4x8x8xf32, #tpu.memory_space<vmem>>, vector<1x1x8xf32>
    %88 = vector.shape_cast %87 : vector<1x1x8xf32> to vector<1x8xf32>
    %89 = vector.shape_cast %86 : vector<1x8xf32> to vector<1x1x8xf32>
    tpu.vector_store %arg7[%c2_57, %c4_58, %c0_59], %89 {strides = array<i32>} : memref<4x8x8xf32, #tpu.memory_space<vmem>>, vector<1x1x8xf32>,
    %90 = vector.extract_strided_slice %5 {offsets = [5, 8], sizes = [1, 8], strides = [1, 1]} : vector<8x32xf32> to vector<1x8xf32>
    %c2_60 = arith.constant 2 : index
    %c5_61 = arith.constant 5 : index
    %c0_62 = arith.constant 0 : index
    %91 = vector.load %arg7[%c2_60, %c5_61, %c0_62] : memref<4x8x8xf32, #tpu.memory_space<vmem>>, vector<1x1x8xf32>
    %92 = vector.shape_cast %91 : vector<1x1x8xf32> to vector<1x8xf32>
    %93 = vector.shape_cast %90 : vector<1x8xf32> to vector<1x1x8xf32>
    tpu.vector_store %arg7[%c2_60, %c5_61, %c0_62], %93 {strides = array<i32>} : memref<4x8x8xf32, #tpu.memory_space<vmem>>, vector<1x1x8xf32>,
    %94 = vector.extract_strided_slice %5 {offsets = [5, 16], sizes = [1, 8], strides = [1, 1]} : vector<8x32xf32> to vector<1x8xf32>
    %c2_63 = arith.constant 2 : index
    %c6_64 = arith.constant 6 : index
    %c0_65 = arith.constant 0 : index
    %95 = vector.load %arg7[%c2_63, %c6_64, %c0_65] : memref<4x8x8xf32, #tpu.memory_space<vmem>>, vector<1x1x8xf32>
    %96 = vector.shape_cast %95 : vector<1x1x8xf32> to vector<1x8xf32>
    %97 = vector.shape_cast %94 : vector<1x8xf32> to vector<1x1x8xf32>
    tpu.vector_store %arg7[%c2_63, %c6_64, %c0_65], %97 {strides = array<i32>} : memref<4x8x8xf32, #tpu.memory_space<vmem>>, vector<1x1x8xf32>,
    %98 = vector.extract_strided_slice %5 {offsets = [5, 24], sizes = [1, 8], strides = [1, 1]} : vector<8x32xf32> to vector<1x8xf32>
    %c2_66 = arith.constant 2 : index
    %c7_67 = arith.constant 7 : index
    %c0_68 = arith.constant 0 : index
    %99 = vector.load %arg7[%c2_66, %c7_67, %c0_68] : memref<4x8x8xf32, #tpu.memory_space<vmem>>, vector<1x1x8xf32>
    %100 = vector.shape_cast %99 : vector<1x1x8xf32> to vector<1x8xf32>
    %101 = vector.shape_cast %98 : vector<1x8xf32> to vector<1x1x8xf32>
    tpu.vector_store %arg7[%c2_66, %c7_67, %c0_68], %101 {strides = array<i32>} : memref<4x8x8xf32, #tpu.memory_space<vmem>>, vector<1x1x8xf32>,
    %102 = vector.extract_strided_slice %5 {offsets = [6, 0], sizes = [1, 8], strides = [1, 1]} : vector<8x32xf32> to vector<1x8xf32>
    %c3_69 = arith.constant 3 : index
    %c0_70 = arith.constant 0 : index
    %c0_71 = arith.constant 0 : index
    %103 = vector.load %arg7[%c3_69, %c0_70, %c0_71] : memref<4x8x8xf32, #tpu.memory_space<vmem>>, vector<1x1x8xf32>
    %104 = vector.shape_cast %103 : vector<1x1x8xf32> to vector<1x8xf32>
    %105 = vector.shape_cast %102 : vector<1x8xf32> to vector<1x1x8xf32>
    tpu.vector_store %arg7[%c3_69, %c0_70, %c0_71], %105 {strides = array<i32>} : memref<4x8x8xf32, #tpu.memory_space<vmem>>, vector<1x1x8xf32>,
    %106 = vector.extract_strided_slice %5 {offsets = [6, 8], sizes = [1, 8], strides = [1, 1]} : vector<8x32xf32> to vector<1x8xf32>
    %c3_72 = arith.constant 3 : index
    %c1_73 = arith.constant 1 : index
    %c0_74 = arith.constant 0 : index
    %107 = vector.load %arg7[%c3_72, %c1_73, %c0_74] : memref<4x8x8xf32, #tpu.memory_space<vmem>>, vector<1x1x8xf32>
    %108 = vector.shape_cast %107 : vector<1x1x8xf32> to vector<1x8xf32>
    %109 = vector.shape_cast %106 : vector<1x8xf32> to vector<1x1x8xf32>
    tpu.vector_store %arg7[%c3_72, %c1_73, %c0_74], %109 {strides = array<i32>} : memref<4x8x8xf32, #tpu.memory_space<vmem>>, vector<1x1x8xf32>,
    %110 = vector.extract_strided_slice %5 {offsets = [6, 16], sizes = [1, 8], strides = [1, 1]} : vector<8x32xf32> to vector<1x8xf32>
    %c3_75 = arith.constant 3 : index
    %c2_76 = arith.constant 2 : index
    %c0_77 = arith.constant 0 : index
    %111 = vector.load %arg7[%c3_75, %c2_76, %c0_77] : memref<4x8x8xf32, #tpu.memory_space<vmem>>, vector<1x1x8xf32>
    %112 = vector.shape_cast %111 : vector<1x1x8xf32> to vector<1x8xf32>
    %113 = vector.shape_cast %110 : vector<1x8xf32> to vector<1x1x8xf32>
    tpu.vector_store %arg7[%c3_75, %c2_76, %c0_77], %113 {strides = array<i32>} : memref<4x8x8xf32, #tpu.memory_space<vmem>>, vector<1x1x8xf32>,
    %114 = vector.extract_strided_slice %5 {offsets = [6, 24], sizes = [1, 8], strides = [1, 1]} : vector<8x32xf32> to vector<1x8xf32>
    %c3_78 = arith.constant 3 : index
    %c3_79 = arith.constant 3 : index
    %c0_80 = arith.constant 0 : index
    %115 = vector.load %arg7[%c3_78, %c3_79, %c0_80] : memref<4x8x8xf32, #tpu.memory_space<vmem>>, vector<1x1x8xf32>
    %116 = vector.shape_cast %115 : vector<1x1x8xf32> to vector<1x8xf32>
    %117 = vector.shape_cast %114 : vector<1x8xf32> to vector<1x1x8xf32>
    tpu.vector_store %arg7[%c3_78, %c3_79, %c0_80], %117 {strides = array<i32>} : memref<4x8x8xf32, #tpu.memory_space<vmem>>, vector<1x1x8xf32>,
    %118 = vector.extract_strided_slice %5 {offsets = [7, 0], sizes = [1, 8], strides = [1, 1]} : vector<8x32xf32> to vector<1x8xf32>
    %c3_81 = arith.constant 3 : index
    %c4_82 = arith.constant 4 : index
    %c0_83 = arith.constant 0 : index
    %119 = vector.load %arg7[%c3_81, %c4_82, %c0_83] : memref<4x8x8xf32, #tpu.memory_space<vmem>>, vector<1x1x8xf32>
    %120 = vector.shape_cast %119 : vector<1x1x8xf32> to vector<1x8xf32>
    %121 = vector.shape_cast %118 : vector<1x8xf32> to vector<1x1x8xf32>
    tpu.vector_store %arg7[%c3_81, %c4_82, %c0_83], %121 {strides = array<i32>} : memref<4x8x8xf32, #tpu.memory_space<vmem>>, vector<1x1x8xf32>,
    %122 = vector.extract_strided_slice %5 {offsets = [7, 8], sizes = [1, 8], strides = [1, 1]} : vector<8x32xf32> to vector<1x8xf32>
    %c3_84 = arith.constant 3 : index
    %c5_85 = arith.constant 5 : index
    %c0_86 = arith.constant 0 : index
    %123 = vector.load %arg7[%c3_84, %c5_85, %c0_86] : memref<4x8x8xf32, #tpu.memory_space<vmem>>, vector<1x1x8xf32>
    %124 = vector.shape_cast %123 : vector<1x1x8xf32> to vector<1x8xf32>
    %125 = vector.shape_cast %122 : vector<1x8xf32> to vector<1x1x8xf32>
    tpu.vector_store %arg7[%c3_84, %c5_85, %c0_86], %125 {strides = array<i32>} : memref<4x8x8xf32, #tpu.memory_space<vmem>>, vector<1x1x8xf32>,
    %126 = vector.extract_strided_slice %5 {offsets = [7, 16], sizes = [1, 8], strides = [1, 1]} : vector<8x32xf32> to vector<1x8xf32>
    %c3_87 = arith.constant 3 : index
    %c6_88 = arith.constant 6 : index
    %c0_89 = arith.constant 0 : index
    %127 = vector.load %arg7[%c3_87, %c6_88, %c0_89] : memref<4x8x8xf32, #tpu.memory_space<vmem>>, vector<1x1x8xf32>
    %128 = vector.shape_cast %127 : vector<1x1x8xf32> to vector<1x8xf32>
    %129 = vector.shape_cast %126 : vector<1x8xf32> to vector<1x1x8xf32>
    tpu.vector_store %arg7[%c3_87, %c6_88, %c0_89], %129 {strides = array<i32>} : memref<4x8x8xf32, #tpu.memory_space<vmem>>, vector<1x1x8xf32>,
    %130 = vector.extract_strided_slice %5 {offsets = [7, 24], sizes = [1, 8], strides = [1, 1]} : vector<8x32xf32> to vector<1x8xf32>
    %c3_90 = arith.constant 3 : index
    %c7_91 = arith.constant 7 : index
    %c0_92 = arith.constant 0 : index
    %131 = vector.load %arg7[%c3_90, %c7_91, %c0_92] : memref<4x8x8xf32, #tpu.memory_space<vmem>>, vector<1x1x8xf32>
    %132 = vector.shape_cast %131 : vector<1x1x8xf32> to vector<1x8xf32>
    %133 = vector.shape_cast %130 : vector<1x8xf32> to vector<1x1x8xf32>
    tpu.vector_store %arg7[%c3_90, %c7_91, %c0_92], %133 {strides = array<i32>} : memref<4x8x8xf32, #tpu.memory_space<vmem>>, vector<1x1x8xf32>,
    %c0_93 = arith.constant 0 : index
    %c0_94 = arith.constant 0 : index
    %c0_95 = arith.constant 0 : index
    %134 = vector.load %arg7[%c0_93, %c0_94, %c0_95] : memref<4x8x8xf32, #tpu.memory_space<vmem>>, vector<4x8x8xf32>
    %135 = arith.truncf %134 : vector<4x8x8xf32> to vector<4x8x8xbf16>
    %cst_96 = arith.constant 0.353553385 : f32
    %136 = vector.broadcast %cst_96 : f32 to vector<4x8x8xf32>
    %137 = arith.mulf %134, %136 : vector<4x8x8xf32>
    %138 = arith.truncf %137 : vector<4x8x8xf32> to vector<4x8x8xbf16>
    %cst_97 = arith.constant dense<0.000000e+00> : vector<4x8x8xf32>
    %139 = tpu.matmul %138, %135, %cst_97 {dimension_numbers = #tpu.dot_dimension_numbers<[2], [2], [1], [1], [0, 0, 0, 1, 1, 1], [0], [0]>} : vector<4x8x8xbf16>, vector<4x8x8xbf16>, vector<4x8x8xf32> -> vector<4x8x8xf32>
    %c0_98 = arith.constant 0 : index
    %c0_99 = arith.constant 0 : index
    %c0_100 = arith.constant 0 : index
    %140 = vector.load %arg2[%c0_98, %c0_99, %c0_100] : memref<1x8x8xi32, #tpu.memory_space<vmem>>, vector<1x8x8xi32>
    %141 = vector.shape_cast %140 : vector<1x8x8xi32> to vector<8x8xi32>
    %142 = vector.shape_cast %141 : vector<8x8xi32> to vector<1x8x8xi32>
    %c0_i32 = arith.constant 0 : i32
    %143 = vector.broadcast %c0_i32 : i32 to vector<1x8x8xi32>
    %144 = arith.cmpi eq, %142, %143 : vector<1x8x8xi32>
    %cst_101 = arith.constant -1.000000e+20 : f32
    %145 = vector.shape_cast %144 : vector<1x8x8xi1> to vector<1x8x8xi1>
    %146 = vector.broadcast %145 : vector<1x8x8xi1> to vector<4x8x8xi1>
    %147 = vector.broadcast %cst_101 : f32 to vector<4x8x8xf32>
    %148 = arith.select %146, %147, %139 : vector<4x8x8xi1>, vector<4x8x8xf32>
    %cst_102 = arith.constant dense<0xFF800000> : vector<4x8xf32>
    %149 = vector.multi_reduction <maximumf>, %148, %cst_102 [2] : vector<4x8x8xf32> to vector<4x8xf32>
    %150 = vector.shape_cast %149 : vector<4x8xf32> to vector<4x8x1xf32>
    %151 = vector.broadcast %150 : vector<4x8x1xf32> to vector<4x8x8xf32>
    %152 = arith.subf %148, %151 : vector<4x8x8xf32>
    %153 = math.exp %152 : vector<4x8x8xf32>
    %cst_103 = arith.constant dense<0.000000e+00> : vector<4x8xf32>
    %154 = vector.multi_reduction <add>, %153, %cst_103 [2] : vector<4x8x8xf32> to vector<4x8xf32>
    %155 = vector.shape_cast %154 : vector<4x8xf32> to vector<4x8x1xf32>
    %156 = tpu.reciprocal %155 {approx = true} : vector<4x8x1xf32> -> vector<4x8x1xf32>
    %157 = vector.broadcast %156 : vector<4x8x1xf32> to vector<4x8x8xf32>
    %158 = arith.mulf %153, %157 : vector<4x8x8xf32>
    %159 = arith.truncf %158 : vector<4x8x8xf32> to vector<4x8x8xbf16>
    %cst_104 = arith.constant dense<0.000000e+00> : vector<4x8x8xf32>
    %160 = tpu.matmul %159, %135, %cst_104 {dimension_numbers = #tpu.dot_dimension_numbers<[2], [1], [1], [2], [0, 0, 0, 1, 1, 2], [0], [0]>} : vector<4x8x8xbf16>, vector<4x8x8xbf16>, vector<4x8x8xf32> -> vector<4x8x8xf32>
    %c0_105 = arith.constant 0 : index
    %c0_106 = arith.constant 0 : index
    %c0_107 = arith.constant 0 : index
    %161 = vector.load %arg7[%c0_105, %c0_106, %c0_107] : memref<4x8x8xf32, #tpu.memory_space<vmem>>, vector<4x8x8xf32>
    tpu.vector_store %arg7[%c0_105, %c0_106, %c0_107], %160 {strides = array<i32>} : memref<4x8x8xf32, #tpu.memory_space<vmem>>, vector<4x8x8xf32>,
    %c0_108 = arith.constant 0 : index
    %c0_109 = arith.constant 0 : index
    %c0_110 = arith.constant 0 : index
    %162 = vector.load %arg7[%c0_108, %c0_109, %c0_110] : memref<4x8x8xf32, #tpu.memory_space<vmem>>, vector<1x1x8xf32>
    %163 = vector.shape_cast %162 : vector<1x1x8xf32> to vector<1x8xf32>
    %c0_111 = arith.constant 0 : index
    %c0_112 = arith.constant 0 : index
    %164 = vector.load %arg8[%c0_111, %c0_112] : memref<8x32xf32, #tpu.memory_space<vmem>>, vector<1x8xf32>
    tpu.vector_store %arg8[%c0_111, %c0_112], %163 {strides = array<i32>} : memref<8x32xf32, #tpu.memory_space<vmem>>, vector<1x8xf32>,
    %c0_113 = arith.constant 0 : index
    %c1_114 = arith.constant 1 : index
    %c0_115 = arith.constant 0 : index
    %165 = vector.load %arg7[%c0_113, %c1_114, %c0_115] : memref<4x8x8xf32, #tpu.memory_space<vmem>>, vector<1x1x8xf32>
    %166 = vector.shape_cast %165 : vector<1x1x8xf32> to vector<1x8xf32>
    %c0_116 = arith.constant 0 : index
    %c8 = arith.constant 8 : index
    %167 = vector.load %arg8[%c0_116, %c8] : memref<8x32xf32, #tpu.memory_space<vmem>>, vector<1x8xf32>
    tpu.vector_store %arg8[%c0_116, %c8], %166 {strides = array<i32>} : memref<8x32xf32, #tpu.memory_space<vmem>>, vector<1x8xf32>,
    %c0_117 = arith.constant 0 : index
    %c2_118 = arith.constant 2 : index
    %c0_119 = arith.constant 0 : index
    %168 = vector.load %arg7[%c0_117, %c2_118, %c0_119] : memref<4x8x8xf32, #tpu.memory_space<vmem>>, vector<1x1x8xf32>
    %169 = vector.shape_cast %168 : vector<1x1x8xf32> to vector<1x8xf32>
    %c0_120 = arith.constant 0 : index
    %c16 = arith.constant 16 : index
    %170 = vector.load %arg8[%c0_120, %c16] : memref<8x32xf32, #tpu.memory_space<vmem>>, vector<1x8xf32>
    tpu.vector_store %arg8[%c0_120, %c16], %169 {strides = array<i32>} : memref<8x32xf32, #tpu.memory_space<vmem>>, vector<1x8xf32>,
    %c0_121 = arith.constant 0 : index
    %c3_122 = arith.constant 3 : index
    %c0_123 = arith.constant 0 : index
    %171 = vector.load %arg7[%c0_121, %c3_122, %c0_123] : memref<4x8x8xf32, #tpu.memory_space<vmem>>, vector<1x1x8xf32>
    %172 = vector.shape_cast %171 : vector<1x1x8xf32> to vector<1x8xf32>
    %c0_124 = arith.constant 0 : index
    %c24 = arith.constant 24 : index
    %173 = vector.load %arg8[%c0_124, %c24] : memref<8x32xf32, #tpu.memory_space<vmem>>, vector<1x8xf32>
    tpu.vector_store %arg8[%c0_124, %c24], %172 {strides = array<i32>} : memref<8x32xf32, #tpu.memory_space<vmem>>, vector<1x8xf32>,
    %c0_125 = arith.constant 0 : index
    %c4_126 = arith.constant 4 : index
    %c0_127 = arith.constant 0 : index
    %174 = vector.load %arg7[%c0_125, %c4_126, %c0_127] : memref<4x8x8xf32, #tpu.memory_space<vmem>>, vector<1x1x8xf32>
    %175 = vector.shape_cast %174 : vector<1x1x8xf32> to vector<1x8xf32>
    %c1_128 = arith.constant 1 : index
    %c0_129 = arith.constant 0 : index
    %176 = vector.load %arg8[%c1_128, %c0_129] : memref<8x32xf32, #tpu.memory_space<vmem>>, vector<1x8xf32>
    tpu.vector_store %arg8[%c1_128, %c0_129], %175 {strides = array<i32>} : memref<8x32xf32, #tpu.memory_space<vmem>>, vector<1x8xf32>,
    %c0_130 = arith.constant 0 : index
    %c5_131 = arith.constant 5 : index
    %c0_132 = arith.constant 0 : index
    %177 = vector.load %arg7[%c0_130, %c5_131, %c0_132] : memref<4x8x8xf32, #tpu.memory_space<vmem>>, vector<1x1x8xf32>
    %178 = vector.shape_cast %177 : vector<1x1x8xf32> to vector<1x8xf32>
    %c1_133 = arith.constant 1 : index
    %c8_134 = arith.constant 8 : index
    %179 = vector.load %arg8[%c1_133, %c8_134] : memref<8x32xf32, #tpu.memory_space<vmem>>, vector<1x8xf32>
    tpu.vector_store %arg8[%c1_133, %c8_134], %178 {strides = array<i32>} : memref<8x32xf32, #tpu.memory_space<vmem>>, vector<1x8xf32>,
    %c0_135 = arith.constant 0 : index
    %c6_136 = arith.constant 6 : index
    %c0_137 = arith.constant 0 : index
    %180 = vector.load %arg7[%c0_135, %c6_136, %c0_137] : memref<4x8x8xf32, #tpu.memory_space<vmem>>, vector<1x1x8xf32>
    %181 = vector.shape_cast %180 : vector<1x1x8xf32> to vector<1x8xf32>
    %c1_138 = arith.constant 1 : index
    %c16_139 = arith.constant 16 : index
    %182 = vector.load %arg8[%c1_138, %c16_139] : memref<8x32xf32, #tpu.memory_space<vmem>>, vector<1x8xf32>
    tpu.vector_store %arg8[%c1_138, %c16_139], %181 {strides = array<i32>} : memref<8x32xf32, #tpu.memory_space<vmem>>, vector<1x8xf32>,
    %c0_140 = arith.constant 0 : index
    %c7_141 = arith.constant 7 : index
    %c0_142 = arith.constant 0 : index
    %183 = vector.load %arg7[%c0_140, %c7_141, %c0_142] : memref<4x8x8xf32, #tpu.memory_space<vmem>>, vector<1x1x8xf32>
    %184 = vector.shape_cast %183 : vector<1x1x8xf32> to vector<1x8xf32>
    %c1_143 = arith.constant 1 : index
    %c24_144 = arith.constant 24 : index
    %185 = vector.load %arg8[%c1_143, %c24_144] : memref<8x32xf32, #tpu.memory_space<vmem>>, vector<1x8xf32>
    tpu.vector_store %arg8[%c1_143, %c24_144], %184 {strides = array<i32>} : memref<8x32xf32, #tpu.memory_space<vmem>>, vector<1x8xf32>,
    %c1_145 = arith.constant 1 : index
    %c0_146 = arith.constant 0 : index
    %c0_147 = arith.constant 0 : index
    %186 = vector.load %arg7[%c1_145, %c0_146, %c0_147] : memref<4x8x8xf32, #tpu.memory_space<vmem>>, vector<1x1x8xf32>
    %187 = vector.shape_cast %186 : vector<1x1x8xf32> to vector<1x8xf32>
    %c2_148 = arith.constant 2 : index
    %c0_149 = arith.constant 0 : index
    %188 = vector.load %arg8[%c2_148, %c0_149] : memref<8x32xf32, #tpu.memory_space<vmem>>, vector<1x8xf32>
    tpu.vector_store %arg8[%c2_148, %c0_149], %187 {strides = array<i32>} : memref<8x32xf32, #tpu.memory_space<vmem>>, vector<1x8xf32>,
    %c1_150 = arith.constant 1 : index
    %c1_151 = arith.constant 1 : index
    %c0_152 = arith.constant 0 : index
    %189 = vector.load %arg7[%c1_150, %c1_151, %c0_152] : memref<4x8x8xf32, #tpu.memory_space<vmem>>, vector<1x1x8xf32>
    %190 = vector.shape_cast %189 : vector<1x1x8xf32> to vector<1x8xf32>
    %c2_153 = arith.constant 2 : index
    %c8_154 = arith.constant 8 : index
    %191 = vector.load %arg8[%c2_153, %c8_154] : memref<8x32xf32, #tpu.memory_space<vmem>>, vector<1x8xf32>
    tpu.vector_store %arg8[%c2_153, %c8_154], %190 {strides = array<i32>} : memref<8x32xf32, #tpu.memory_space<vmem>>, vector<1x8xf32>,
    %c1_155 = arith.constant 1 : index
    %c2_156 = arith.constant 2 : index
    %c0_157 = arith.constant 0 : index
    %192 = vector.load %arg7[%c1_155, %c2_156, %c0_157] : memref<4x8x8xf32, #tpu.memory_space<vmem>>, vector<1x1x8xf32>
    %193 = vector.shape_cast %192 : vector<1x1x8xf32> to vector<1x8xf32>
    %c2_158 = arith.constant 2 : index
    %c16_159 = arith.constant 16 : index
    %194 = vector.load %arg8[%c2_158, %c16_159] : memref<8x32xf32, #tpu.memory_space<vmem>>, vector<1x8xf32>
    tpu.vector_store %arg8[%c2_158, %c16_159], %193 {strides = array<i32>} : memref<8x32xf32, #tpu.memory_space<vmem>>, vector<1x8xf32>,
    %c1_160 = arith.constant 1 : index
    %c3_161 = arith.constant 3 : index
    %c0_162 = arith.constant 0 : index
    %195 = vector.load %arg7[%c1_160, %c3_161, %c0_162] : memref<4x8x8xf32, #tpu.memory_space<vmem>>, vector<1x1x8xf32>
    %196 = vector.shape_cast %195 : vector<1x1x8xf32> to vector<1x8xf32>
    %c2_163 = arith.constant 2 : index
    %c24_164 = arith.constant 24 : index
    %197 = vector.load %arg8[%c2_163, %c24_164] : memref<8x32xf32, #tpu.memory_space<vmem>>, vector<1x8xf32>
    tpu.vector_store %arg8[%c2_163, %c24_164], %196 {strides = array<i32>} : memref<8x32xf32, #tpu.memory_space<vmem>>, vector<1x8xf32>,
    %c1_165 = arith.constant 1 : index
    %c4_166 = arith.constant 4 : index
    %c0_167 = arith.constant 0 : index
    %198 = vector.load %arg7[%c1_165, %c4_166, %c0_167] : memref<4x8x8xf32, #tpu.memory_space<vmem>>, vector<1x1x8xf32>
    %199 = vector.shape_cast %198 : vector<1x1x8xf32> to vector<1x8xf32>
    %c3_168 = arith.constant 3 : index
    %c0_169 = arith.constant 0 : index
    %200 = vector.load %arg8[%c3_168, %c0_169] : memref<8x32xf32, #tpu.memory_space<vmem>>, vector<1x8xf32>
    tpu.vector_store %arg8[%c3_168, %c0_169], %199 {strides = array<i32>} : memref<8x32xf32, #tpu.memory_space<vmem>>, vector<1x8xf32>,
    %c1_170 = arith.constant 1 : index
    %c5_171 = arith.constant 5 : index
    %c0_172 = arith.constant 0 : index
    %201 = vector.load %arg7[%c1_170, %c5_171, %c0_172] : memref<4x8x8xf32, #tpu.memory_space<vmem>>, vector<1x1x8xf32>
    %202 = vector.shape_cast %201 : vector<1x1x8xf32> to vector<1x8xf32>
    %c3_173 = arith.constant 3 : index
    %c8_174 = arith.constant 8 : index
    %203 = vector.load %arg8[%c3_173, %c8_174] : memref<8x32xf32, #tpu.memory_space<vmem>>, vector<1x8xf32>
    tpu.vector_store %arg8[%c3_173, %c8_174], %202 {strides = array<i32>} : memref<8x32xf32, #tpu.memory_space<vmem>>, vector<1x8xf32>,
    %c1_175 = arith.constant 1 : index
    %c6_176 = arith.constant 6 : index
    %c0_177 = arith.constant 0 : index
    %204 = vector.load %arg7[%c1_175, %c6_176, %c0_177] : memref<4x8x8xf32, #tpu.memory_space<vmem>>, vector<1x1x8xf32>
    %205 = vector.shape_cast %204 : vector<1x1x8xf32> to vector<1x8xf32>
    %c3_178 = arith.constant 3 : index
    %c16_179 = arith.constant 16 : index
    %206 = vector.load %arg8[%c3_178, %c16_179] : memref<8x32xf32, #tpu.memory_space<vmem>>, vector<1x8xf32>
    tpu.vector_store %arg8[%c3_178, %c16_179], %205 {strides = array<i32>} : memref<8x32xf32, #tpu.memory_space<vmem>>, vector<1x8xf32>,
    %c1_180 = arith.constant 1 : index
    %c7_181 = arith.constant 7 : index
    %c0_182 = arith.constant 0 : index
    %207 = vector.load %arg7[%c1_180, %c7_181, %c0_182] : memref<4x8x8xf32, #tpu.memory_space<vmem>>, vector<1x1x8xf32>
    %208 = vector.shape_cast %207 : vector<1x1x8xf32> to vector<1x8xf32>
    %c3_183 = arith.constant 3 : index
    %c24_184 = arith.constant 24 : index
    %209 = vector.load %arg8[%c3_183, %c24_184] : memref<8x32xf32, #tpu.memory_space<vmem>>, vector<1x8xf32>
    tpu.vector_store %arg8[%c3_183, %c24_184], %208 {strides = array<i32>} : memref<8x32xf32, #tpu.memory_space<vmem>>, vector<1x8xf32>,
    %c2_185 = arith.constant 2 : index
    %c0_186 = arith.constant 0 : index
    %c0_187 = arith.constant 0 : index
    %210 = vector.load %arg7[%c2_185, %c0_186, %c0_187] : memref<4x8x8xf32, #tpu.memory_space<vmem>>, vector<1x1x8xf32>
    %211 = vector.shape_cast %210 : vector<1x1x8xf32> to vector<1x8xf32>
    %c4_188 = arith.constant 4 : index
    %c0_189 = arith.constant 0 : index
    %212 = vector.load %arg8[%c4_188, %c0_189] : memref<8x32xf32, #tpu.memory_space<vmem>>, vector<1x8xf32>
    tpu.vector_store %arg8[%c4_188, %c0_189], %211 {strides = array<i32>} : memref<8x32xf32, #tpu.memory_space<vmem>>, vector<1x8xf32>,
    %c2_190 = arith.constant 2 : index
    %c1_191 = arith.constant 1 : index
    %c0_192 = arith.constant 0 : index
    %213 = vector.load %arg7[%c2_190, %c1_191, %c0_192] : memref<4x8x8xf32, #tpu.memory_space<vmem>>, vector<1x1x8xf32>
    %214 = vector.shape_cast %213 : vector<1x1x8xf32> to vector<1x8xf32>
    %c4_193 = arith.constant 4 : index
    %c8_194 = arith.constant 8 : index
    %215 = vector.load %arg8[%c4_193, %c8_194] : memref<8x32xf32, #tpu.memory_space<vmem>>, vector<1x8xf32>
    tpu.vector_store %arg8[%c4_193, %c8_194], %214 {strides = array<i32>} : memref<8x32xf32, #tpu.memory_space<vmem>>, vector<1x8xf32>,
    %c2_195 = arith.constant 2 : index
    %c2_196 = arith.constant 2 : index
    %c0_197 = arith.constant 0 : index
    %216 = vector.load %arg7[%c2_195, %c2_196, %c0_197] : memref<4x8x8xf32, #tpu.memory_space<vmem>>, vector<1x1x8xf32>
    %217 = vector.shape_cast %216 : vector<1x1x8xf32> to vector<1x8xf32>
    %c4_198 = arith.constant 4 : index
    %c16_199 = arith.constant 16 : index
    %218 = vector.load %arg8[%c4_198, %c16_199] : memref<8x32xf32, #tpu.memory_space<vmem>>, vector<1x8xf32>
    tpu.vector_store %arg8[%c4_198, %c16_199], %217 {strides = array<i32>} : memref<8x32xf32, #tpu.memory_space<vmem>>, vector<1x8xf32>,
    %c2_200 = arith.constant 2 : index
    %c3_201 = arith.constant 3 : index
    %c0_202 = arith.constant 0 : index
    %219 = vector.load %arg7[%c2_200, %c3_201, %c0_202] : memref<4x8x8xf32, #tpu.memory_space<vmem>>, vector<1x1x8xf32>
    %220 = vector.shape_cast %219 : vector<1x1x8xf32> to vector<1x8xf32>
    %c4_203 = arith.constant 4 : index
    %c24_204 = arith.constant 24 : index
    %221 = vector.load %arg8[%c4_203, %c24_204] : memref<8x32xf32, #tpu.memory_space<vmem>>, vector<1x8xf32>
    tpu.vector_store %arg8[%c4_203, %c24_204], %220 {strides = array<i32>} : memref<8x32xf32, #tpu.memory_space<vmem>>, vector<1x8xf32>,
    %c2_205 = arith.constant 2 : index
    %c4_206 = arith.constant 4 : index
    %c0_207 = arith.constant 0 : index
    %222 = vector.load %arg7[%c2_205, %c4_206, %c0_207] : memref<4x8x8xf32, #tpu.memory_space<vmem>>, vector<1x1x8xf32>
    %223 = vector.shape_cast %222 : vector<1x1x8xf32> to vector<1x8xf32>
    %c5_208 = arith.constant 5 : index
    %c0_209 = arith.constant 0 : index
    %224 = vector.load %arg8[%c5_208, %c0_209] : memref<8x32xf32, #tpu.memory_space<vmem>>, vector<1x8xf32>
    tpu.vector_store %arg8[%c5_208, %c0_209], %223 {strides = array<i32>} : memref<8x32xf32, #tpu.memory_space<vmem>>, vector<1x8xf32>,
    %c2_210 = arith.constant 2 : index
    %c5_211 = arith.constant 5 : index
    %c0_212 = arith.constant 0 : index
    %225 = vector.load %arg7[%c2_210, %c5_211, %c0_212] : memref<4x8x8xf32, #tpu.memory_space<vmem>>, vector<1x1x8xf32>
    %226 = vector.shape_cast %225 : vector<1x1x8xf32> to vector<1x8xf32>
    %c5_213 = arith.constant 5 : index
    %c8_214 = arith.constant 8 : index
    %227 = vector.load %arg8[%c5_213, %c8_214] : memref<8x32xf32, #tpu.memory_space<vmem>>, vector<1x8xf32>
    tpu.vector_store %arg8[%c5_213, %c8_214], %226 {strides = array<i32>} : memref<8x32xf32, #tpu.memory_space<vmem>>, vector<1x8xf32>,
    %c2_215 = arith.constant 2 : index
    %c6_216 = arith.constant 6 : index
    %c0_217 = arith.constant 0 : index
    %228 = vector.load %arg7[%c2_215, %c6_216, %c0_217] : memref<4x8x8xf32, #tpu.memory_space<vmem>>, vector<1x1x8xf32>
    %229 = vector.shape_cast %228 : vector<1x1x8xf32> to vector<1x8xf32>
    %c5_218 = arith.constant 5 : index
    %c16_219 = arith.constant 16 : index
    %230 = vector.load %arg8[%c5_218, %c16_219] : memref<8x32xf32, #tpu.memory_space<vmem>>, vector<1x8xf32>
    tpu.vector_store %arg8[%c5_218, %c16_219], %229 {strides = array<i32>} : memref<8x32xf32, #tpu.memory_space<vmem>>, vector<1x8xf32>,
    %c2_220 = arith.constant 2 : index
    %c7_221 = arith.constant 7 : index
    %c0_222 = arith.constant 0 : index
    %231 = vector.load %arg7[%c2_220, %c7_221, %c0_222] : memref<4x8x8xf32, #tpu.memory_space<vmem>>, vector<1x1x8xf32>
    %232 = vector.shape_cast %231 : vector<1x1x8xf32> to vector<1x8xf32>
    %c5_223 = arith.constant 5 : index
    %c24_224 = arith.constant 24 : index
    %233 = vector.load %arg8[%c5_223, %c24_224] : memref<8x32xf32, #tpu.memory_space<vmem>>, vector<1x8xf32>
    tpu.vector_store %arg8[%c5_223, %c24_224], %232 {strides = array<i32>} : memref<8x32xf32, #tpu.memory_space<vmem>>, vector<1x8xf32>,
    %c3_225 = arith.constant 3 : index
    %c0_226 = arith.constant 0 : index
    %c0_227 = arith.constant 0 : index
    %234 = vector.load %arg7[%c3_225, %c0_226, %c0_227] : memref<4x8x8xf32, #tpu.memory_space<vmem>>, vector<1x1x8xf32>
    %235 = vector.shape_cast %234 : vector<1x1x8xf32> to vector<1x8xf32>
    %c6_228 = arith.constant 6 : index
    %c0_229 = arith.constant 0 : index
    %236 = vector.load %arg8[%c6_228, %c0_229] : memref<8x32xf32, #tpu.memory_space<vmem>>, vector<1x8xf32>
    tpu.vector_store %arg8[%c6_228, %c0_229], %235 {strides = array<i32>} : memref<8x32xf32, #tpu.memory_space<vmem>>, vector<1x8xf32>,
    %c3_230 = arith.constant 3 : index
    %c1_231 = arith.constant 1 : index
    %c0_232 = arith.constant 0 : index
    %237 = vector.load %arg7[%c3_230, %c1_231, %c0_232] : memref<4x8x8xf32, #tpu.memory_space<vmem>>, vector<1x1x8xf32>
    %238 = vector.shape_cast %237 : vector<1x1x8xf32> to vector<1x8xf32>
    %c6_233 = arith.constant 6 : index
    %c8_234 = arith.constant 8 : index
    %239 = vector.load %arg8[%c6_233, %c8_234] : memref<8x32xf32, #tpu.memory_space<vmem>>, vector<1x8xf32>
    tpu.vector_store %arg8[%c6_233, %c8_234], %238 {strides = array<i32>} : memref<8x32xf32, #tpu.memory_space<vmem>>, vector<1x8xf32>,
    %c3_235 = arith.constant 3 : index
    %c2_236 = arith.constant 2 : index
    %c0_237 = arith.constant 0 : index
    %240 = vector.load %arg7[%c3_235, %c2_236, %c0_237] : memref<4x8x8xf32, #tpu.memory_space<vmem>>, vector<1x1x8xf32>
    %241 = vector.shape_cast %240 : vector<1x1x8xf32> to vector<1x8xf32>
    %c6_238 = arith.constant 6 : index
    %c16_239 = arith.constant 16 : index
    %242 = vector.load %arg8[%c6_238, %c16_239] : memref<8x32xf32, #tpu.memory_space<vmem>>, vector<1x8xf32>
    tpu.vector_store %arg8[%c6_238, %c16_239], %241 {strides = array<i32>} : memref<8x32xf32, #tpu.memory_space<vmem>>, vector<1x8xf32>,
    %c3_240 = arith.constant 3 : index
    %c3_241 = arith.constant 3 : index
    %c0_242 = arith.constant 0 : index
    %243 = vector.load %arg7[%c3_240, %c3_241, %c0_242] : memref<4x8x8xf32, #tpu.memory_space<vmem>>, vector<1x1x8xf32>
    %244 = vector.shape_cast %243 : vector<1x1x8xf32> to vector<1x8xf32>
    %c6_243 = arith.constant 6 : index
    %c24_244 = arith.constant 24 : index
    %245 = vector.load %arg8[%c6_243, %c24_244] : memref<8x32xf32, #tpu.memory_space<vmem>>, vector<1x8xf32>
    tpu.vector_store %arg8[%c6_243, %c24_244], %244 {strides = array<i32>} : memref<8x32xf32, #tpu.memory_space<vmem>>, vector<1x8xf32>,
    %c3_245 = arith.constant 3 : index
    %c4_246 = arith.constant 4 : index
    %c0_247 = arith.constant 0 : index
    %246 = vector.load %arg7[%c3_245, %c4_246, %c0_247] : memref<4x8x8xf32, #tpu.memory_space<vmem>>, vector<1x1x8xf32>
    %247 = vector.shape_cast %246 : vector<1x1x8xf32> to vector<1x8xf32>
    %c7_248 = arith.constant 7 : index
    %c0_249 = arith.constant 0 : index
    %248 = vector.load %arg8[%c7_248, %c0_249] : memref<8x32xf32, #tpu.memory_space<vmem>>, vector<1x8xf32>
    tpu.vector_store %arg8[%c7_248, %c0_249], %247 {strides = array<i32>} : memref<8x32xf32, #tpu.memory_space<vmem>>, vector<1x8xf32>,
    %c3_250 = arith.constant 3 : index
    %c5_251 = arith.constant 5 : index
    %c0_252 = arith.constant 0 : index
    %249 = vector.load %arg7[%c3_250, %c5_251, %c0_252] : memref<4x8x8xf32, #tpu.memory_space<vmem>>, vector<1x1x8xf32>
    %250 = vector.shape_cast %249 : vector<1x1x8xf32> to vector<1x8xf32>
    %c7_253 = arith.constant 7 : index
    %c8_254 = arith.constant 8 : index
    %251 = vector.load %arg8[%c7_253, %c8_254] : memref<8x32xf32, #tpu.memory_space<vmem>>, vector<1x8xf32>
    tpu.vector_store %arg8[%c7_253, %c8_254], %250 {strides = array<i32>} : memref<8x32xf32, #tpu.memory_space<vmem>>, vector<1x8xf32>,
    %c3_255 = arith.constant 3 : index
    %c6_256 = arith.constant 6 : index
    %c0_257 = arith.constant 0 : index
    %252 = vector.load %arg7[%c3_255, %c6_256, %c0_257] : memref<4x8x8xf32, #tpu.memory_space<vmem>>, vector<1x1x8xf32>
    %253 = vector.shape_cast %252 : vector<1x1x8xf32> to vector<1x8xf32>
    %c7_258 = arith.constant 7 : index
    %c16_259 = arith.constant 16 : index
    %254 = vector.load %arg8[%c7_258, %c16_259] : memref<8x32xf32, #tpu.memory_space<vmem>>, vector<1x8xf32>
    tpu.vector_store %arg8[%c7_258, %c16_259], %253 {strides = array<i32>} : memref<8x32xf32, #tpu.memory_space<vmem>>, vector<1x8xf32>,
    %c3_260 = arith.constant 3 : index
    %c7_261 = arith.constant 7 : index
    %c0_262 = arith.constant 0 : index
    %255 = vector.load %arg7[%c3_260, %c7_261, %c0_262] : memref<4x8x8xf32, #tpu.memory_space<vmem>>, vector<1x1x8xf32>
    %256 = vector.shape_cast %255 : vector<1x1x8xf32> to vector<1x8xf32>
    %c7_263 = arith.constant 7 : index
    %c24_264 = arith.constant 24 : index
    %257 = vector.load %arg8[%c7_263, %c24_264] : memref<8x32xf32, #tpu.memory_space<vmem>>, vector<1x8xf32>
    tpu.vector_store %arg8[%c7_263, %c24_264], %256 {strides = array<i32>} : memref<8x32xf32, #tpu.memory_space<vmem>>, vector<1x8xf32>,
    %c0_265 = arith.constant 0 : index
    %c0_266 = arith.constant 0 : index
    %258 = vector.load %arg8[%c0_265, %c0_266] : memref<8x32xf32, #tpu.memory_space<vmem>>, vector<8x32xf32>
    %259 = arith.truncf %258 : vector<8x32xf32> to vector<8x32xbf16>
    %c0_267 = arith.constant 0 : index
    %c0_268 = arith.constant 0 : index
    %260 = vector.load %arg4[%c0_267, %c0_268] : memref<32x32xf32, #tpu.memory_space<vmem>>, vector<32x32xf32>
    %261 = arith.truncf %260 : vector<32x32xf32> to vector<32x32xbf16>
    %cst_269 = arith.constant dense<0.000000e+00> : vector<8x32xf32>
    %262 = tpu.matmul %259, %261, %cst_269 {dimension_numbers = #tpu.dot_dimension_numbers<[1], [0], [0], [1], [0, 0, 1, 1], [], []>} : vector<8x32xbf16>, vector<32x32xbf16>, vector<8x32xf32> -> vector<8x32xf32>
    %c0_270 = arith.constant 0 : index
    %c0_271 = arith.constant 0 : index
    %263 = vector.load %arg5[%c0_270, %c0_271] : memref<1x32xf32, #tpu.memory_space<vmem>>, vector<1x32xf32>
    %264 = vector.broadcast %263 : vector<1x32xf32> to vector<8x32xf32>
    %265 = arith.addf %262, %264 : vector<8x32xf32>
    %c0_272 = arith.constant 0 : index
    %c0_273 = arith.constant 0 : index
    %c0_274 = arith.constant 0 : index
    %266 = vector.load %arg6[%c0_272, %c0_273, %c0_274] : memref<1x8x32xf32, #tpu.memory_space<vmem>>, vector<1x8x32xf32>
    %267 = vector.shape_cast %266 : vector<1x8x32xf32> to vector<8x32xf32>
    %268 = vector.shape_cast %265 : vector<8x32xf32> to vector<1x8x32xf32>
    tpu.vector_store %arg6[%c0_272, %c0_273, %c0_274], %268 {strides = array<i32>} : memref<1x8x32xf32, #tpu.memory_space<vmem>>, vector<1x8x32xf32>,
    return
  }
  func.func @transform_0(%arg0: i32) -> (i32, i32, i32) {
    %c0_i32 = arith.constant 0 : i32
    %c0_i32_0 = arith.constant 0 : i32
    %c0_i32_1 = arith.constant 0 : i32
    return %arg0, %c0_i32, %c0_i32_0 : i32, i32, i32
  }
  func.func @transform_1(%arg0: i32) -> (i32, i32, i32) {
    %c0_i32 = arith.constant 0 : i32
    %c0_i32_0 = arith.constant 0 : i32
    %c0_i32_1 = arith.constant 0 : i32
    %c0_i32_2 = arith.constant 0 : i32
    return %c0_i32, %c0_i32_0, %c0_i32_1 : i32, i32, i32
  }
  func.func @transform_2(%arg0: i32) -> (i32, i32) {
    %c0_i32 = arith.constant 0 : i32
    %c0_i32_0 = arith.constant 0 : i32
    %c0_i32_1 = arith.constant 0 : i32
    return %c0_i32, %c0_i32_0 : i32, i32
  }
  func.func @transform_3(%arg0: i32) -> (i32, i32) {
    %c0_i32 = arith.constant 0 : i32
    %c0_i32_0 = arith.constant 0 : i32
    %c0_i32_1 = arith.constant 0 : i32
    return %c0_i32, %c0_i32_0 : i32, i32
  }
  func.func @transform_4(%arg0: i32) -> (i32, i32) {
    %c0_i32 = arith.constant 0 : i32
    %c0_i32_0 = arith.constant 0 : i32
    %c0_i32_1 = arith.constant 0 : i32
    return %c0_i32, %c0_i32_0 : i32, i32
  }
  func.func @transform_5(%arg0: i32) -> (i32, i32, i32) {
    %c0_i32 = arith.constant 0 : i32
    %c0_i32_0 = arith.constant 0 : i32
    %c0_i32_1 = arith.constant 0 : i32
    return %arg0, %c0_i32, %c0_i32_0 : i32, i32, i32
  }
}

</mosaic_0001>

<bundles_post_ra>
// kernel: tpu_custom_call.1
= control target key start
LH: loop header
LB: loop body
LE: loop exit
PB: predicated region body
PF: predicated region fallthrough
CT: control target
= control target key end

     0   :  { %10 = vsyncpa [#allocation5], 0  ;;  %s1557_s0 = inlined_call_operand.hbm [shape: f32[2,8,32], index: 0, kind: input, shape index: {}]   ;;  %s1558_s1 = inlined_call_operand.hbm [shape: s32[1,8,8], index: 1, kind: input, shape index: {}]   ;;  %s1559_s2 = inlined_call_operand.hbm [shape: f32[32,32], index: 2, kind: input, shape index: {}]   ;;  %s1560_s3 = inlined_call_operand.hbm [shape: f32[32,32], index: 3, kind: input, shape index: {}]   ;;  %s1561_s4 = inlined_call_operand.vmem [shape: f32[1,32], index: 4, kind: input, shape index: {}]   ;;  %s1562_s5 = inlined_call_operand.hbm [shape: f32[2,8,32], index: 5, kind: output, shape index: {}]  }
   0x1   :  { %12 = vsyncpa [#allocation5 + $0x1], 0 }
   0x2   :  { %13 = vsyncpa [#allocation8], 0 }
   0x3   :  { %14 = vsyncpa [#allocation11], 0 }
   0x4   :  { %15 = vsyncpa [#allocation6], 0 }
   0x5   :  { %17 = vsyncpa [#allocation6 + $0x1], 0  ;;  %s1269_s18 = smov 0   ;;  %s1271_s19 = smov 0  }
   0x6   :  { %s1273_s20 = smov 0   ;;  %s1275_s21 = smov 0  }
   0x7 LB: > { %s1290_s22 = sadd.s32 4294967295, %s1226_s21   ;;  %s902_s23 = sadd.s32 4294967294, %s1226_s21   ;;  %s1226_s21 = sphi %s1275_s21, %s1573_s21   ;;  %s1222_s20 = sphi %s1273_s20, %s1572_s20   ;;  %s1218_s19 = sphi %s1271_s19, %s1571_s19   ;;  %s1214_s18 = sphi %s1269_s18, %s1570_s18  }
   0x8   : > { %p43_p0 = scmp.ne.s32.totalorder %s1218_s19, %s1214_s18  ;;  %p44_p1 = scmp.eq.s32.totalorder %s1290_s22, 0 }
   0x9   : > { %p151_p2 = scmp.eq.s32.totalorder %s1290_s22, 1  ;;  %p157_p3 = scmp.eq.s32.totalorder %s902_s23, 1 }
   0xa   : > { %p1299_p4 = por %p44_p1, %p43_p0  ;;  %p903_p5 = scmp.ge.s32.totalorder %s1226_s21, 1 }
   0xb   : > { %p1304_p6 = por %p157_p3, %p43_p0  ;;  %p164_p7 = scmp.lt.s32.totalorder %s1226_s21, 3 }
   0xc   : > { %s176_s28 = sshll.u32 %s1558_s1, 4  ;;  %s1228_s30 = smov [#allocation7]   ;;  %s177_s28 = int_to_ptr.hbm [resolvable:$true] %s176_s28 }
   0xd   : > { %p1312_p8 = pnand %p903_p5, %p164_p7  ;;  %s178_s6 = sshll.u32 %s1228_s30, 4  ;;  %s179_s6 = int_to_ptr.vmem [resolvable:$true] %s178_s6 }
   0xe   : > { %s187_s9 = sshll.u32 %s1559_s2, 4  ;;  %s1229_s11 = smov [#allocation9]   ;;  %s188_s9 = int_to_ptr.hbm [resolvable:$true] %s187_s9 }
   0xf   : > { %p946_p10 = pneg %p1312_p8  ;;  %s189_s12 = sshll.u32 %s1229_s11, 4  ;;  %s190_s12 = int_to_ptr.vmem [resolvable:$true] %s189_s12 }
  0x10   : > { %s1230_s13 = smov 128   ;;  %s1231_s14 = smov 8  }
  0x11   : > { %p1324_p11 = pnand %p946_p10, %p44_p1  ;;  %s201_s17 = sshll.u32 %s1560_s3, 4  ;;  %s202_s17 = int_to_ptr.hbm [resolvable:$true] %s201_s17 }
  0x12   : > { %s1232_s23 = smov [#allocation10]   ;;  %s1338_s27 = sadd.s32 1, %s1226_s21  }
  0x13   : > { %949 = dma.hbm_to_vmem [thread:$0]  (!%p1324_p11), %s177_s28, 128, %s179_s6, [#allocation8]  }
  0x14   : > { %952 = dma.hbm_to_vmem [thread:$0]  (!%p1324_p11), %s188_s9, 512, %s190_s12, [#allocation8], %s1230_s13, %s1230_s13, %s1231_s14  }
  0x15   : > { %s203_s26 = sshll.u32 %s1232_s23, 4  ;;  %s27_s28 = ssub.s32 %s1226_s21, %s1338_s27  ;;  %s204_s26 = int_to_ptr.vmem [resolvable:$true] %s203_s26 }
  0x16   : > { %955 = dma.hbm_to_vmem [thread:$0]  (!%p1324_p11), %s202_s17, 512, %s204_s26, [#allocation11], %s1230_s13, %s1230_s13, %s1231_s14  }
  0x17   : > { %s30_s30 = sadd.s32 1, %s1222_s20  ;;  %p28_p12 = scmp.eq.s32.totalorder %s27_s28, 0 }
  0x18   : > { %p37_p13 = scmp.ne.s32.totalorder %s1222_s20, %s1218_s19  ;;  %p38_p0 = scmp.eq.s32.totalorder %s1226_s21, 0 }
  0x19   : > { %s1347_s6 = scalar_select %p28_p12, %s1222_s20, %s30_s30  }
  0x1a   : > { %p1351_p3 = por %p151_p2, %p37_p13  ;;  %p967_p5 = scmp.lt.s32.totalorder %s1226_s21, 2 }
  0x1b   : > { %s220_s8 = sand.u32 1, %s1222_s20   ;;  %s909_s9 = sshll.u32 %s1226_s21, 3 }
  0x1c   : > { %p39_p7 = por %p38_p0, %p37_p13  ;;  %s908_s10 = sshll.u32 %s220_s8, 3 }
  0x1d   : > { %s228_s13 = scalar_lea.hbm %s1557_s0, %s909_s9  ;;  %s224_s15 = scalar_lea.vmem [#allocation4], %s908_s10 }
  0x1e   : > { %s230_s14 = sshll.u32 %s228_s13, 4  ;;  %s232_s16 = sshll.u32 %s224_s15, 4  ;;  %s231_s14 = int_to_ptr.hbm [resolvable:$true] %s230_s14  ;;  %s233_s16 = int_to_ptr.vmem [resolvable:$true] %s232_s16 }
  0x1f   : > { %p1361_p10 = pnand %p967_p5, %p39_p7  ;;  %s221_s23 = scalar_lea.sflag [#allocation5], %s220_s8 }
  0x20   : > { %s1122_s26 = sshra.s32 %s231_s14, 4  ;;  %s1129_s10 = scalar_lea.hbm %s1557_s0, 16  ;;  %s1123_s26 = int_to_ptr.hbm [resolvable:$true] %s1122_s26 }
  0x21   : > { %s1124_s28 = scalar_lea.hbm %s1123_s26, 8  ;;  %p1126_p11 = pneg %p1361_p10 }
  0x22   : > { %p1125_p2 = scmp.ne.s32.totalorder %s1123_s26, %s1124_s28  ;;  %p1130_p0 = scmp.lt.s32.totalorder %s1123_s26, %s1557_s0 }
  0x23   : > { %p1131_p5 = scmp.lt.s32.totalorder %s1129_s10, %s1124_s28 }
  0x24   : > { %p1127_p12 = pnand %p1126_p11, %p1125_p2 }
  0x25   : > { %p1132_p7 = por %p1131_p5, %p1130_p0 }
  0x26   : > { %p1128_p13 = pneg %p1127_p12 }
  0x28   : > { %p1133_p9 = pnand %p1132_p7, %p1128_p13 }
  0x2a   : > { %1136 = shalt.err (!%p1133_p9)
}
  0x2b   : > { %959 = dma.hbm_to_vmem [thread:$0]  (!%p1361_p10), %s231_s14, 128, %s233_s16, %s221_s23  }
  0x2c   : > { %241 = sbr.rel (%p1312_p8) target bundleno = 1207 (0x4b7), region = 40  ;;  %s1378_s8 = sand.u32 (!%p1312_p8), 1, %s1218_s19  }
  0x2d   : > { %s911_s13 = sshll.u32 (!%p1312_p8), %s1378_s8, 3  ;;  %s244_s15 = scalar_lea.sflag (!%p1312_p8), [#allocation5], %s1378_s8 }
  0x2e   : > { %s247_s26 = scalar_lea.vmem (!%p1312_p8), [#allocation4], %s911_s13 }
  0x31   : > { %1197 = dma.done.wait (%p1299_p4), %s244_s15, 128  }
  0x32   : > { %1199 = vsyncadd (%p1299_p4), %s244_s15, 4294967168 }
  0x33   : > { %1201 = dma.done.wait (%p44_p1), [#allocation8], 640  }
  0x34   : > { %1203 = vsyncadd (%p44_p1), [#allocation8], 4294966656 }
  0x35   : > { %1205 = dma.done.wait (%p44_p1), [#allocation11], 512  }
  0x36   : > { %1207 = vsyncadd (%p44_p1), [#allocation11], 4294966784  ;;  %v295_v0 = vld [vmem:[#allocation9 + $0x10] sm:$0xff]  ;;  %v296_v1 = vld [vmem:[#allocation9 + $0x18] sm:$0xff]  ;;  %vm299_vm0 = vcmask 261120   ;;  %vm316_vm1 = vcmask 57344  }
  0x37   : > { %v293_v2 = vld [vmem:[#allocation9] sm:$0xff]  ;;  %v298_v3 = vpack.c.bf16 %v296_v1, %v295_v0  ;;  %v294_v4 = vld [vmem:[#allocation9 + $0x8] sm:$0xff]  ;;  %vm331_vm2 = vcmask 58369   ;;  %vm337_vm3 = vcmask 59394   ;;  %s1233_s24 = smov 104   ;;  %s1234_s29 = smov 120  }
  0x38   : > { %v297_v5 = vpack.c.bf16 %v294_v4, %v293_v2  ;;  %v291_v6 = vld [vmem:[%s247_s26] sm:$0xff]  ;;  %vm342_vm4 = vcmask 60419   ;;  %vm348_vm5 = vcmask 61444   ;;  %vm353_vm6 = vcmask 62469   ;;  %s1235_s14 = smov 112   ;;  %v462_v38 = vld [vmem:[#allocation7] sm:$0xff] }
  0x39   : > { %309 = vmatpush.bf16.msra.mxu0 %v298_v3  ;;  %v292_v7 = vpack.c.bf16 %v291_v6, %v291_v6  ;;  %vm359_vm7 = vcmask 63494   ;;  %vm364_vm8 = vcmask 64519   ;;  %vm385_vm9 = vcmask 64512   ;;  %s1236_s16 = smov 8   ;;  %s1237_s17 = smov 16  }
  0x3a   : > { %vm521_vm10 = vcmask 1043456   ;;  %vm463_vm11 = vcmp.eq.s32.totalorder %v462_v38, 0  ;;  %s1238_s23 = smov 24   ;;  %vm602_vm12 = vcmask 122944   ;;  %vm609_vm13 = vcmask 188544   ;;  %s927_s28 = sshll.u32 %s1290_s22, 3 }
  0x3b   : > { %vm616_vm14 = vcmask 254144   ;;  %s798_s10 = scalar_lea.hbm %s1562_s5, %s927_s28  ;;  %s289_s15 = scalar_lea.vmem [#allocation12], %s911_s13 }
  0x3c   : > { %s800_s26 = sshll.u32 %s289_s15, 4  ;;  %s788_s22 = scalar_lea.sflag [#allocation6], %s1378_s8  ;;  %s801_s26 = int_to_ptr.vmem [resolvable:$true] %s800_s26 }
  0x3d   : > { %310 = vmatpush.bf16.msra.mxu0 %v297_v5  ;;  %s1172_s13 = scalar_lea.hbm %s1562_s5, 16 }
  0x40   : > { %916 = vmatmul.msk.bf16.vlgmr.msra.gmra.mxu0 %vm299_vm0, %v292_v7 }
  0xbd   : > { %v312_v8 = vpop.f32.mrf.mxu0 }
  0xbe   : > { %317 = vst.msk [vmem:[#allocation2] sm:$0x1] %vm316_vm1, %v312_v8  ;;  %327 = vrot.lane.b32.xlu1 %v312_v8, %s1233_s24  ;;  %319 = vrot.lane.b32.xlu0 %v312_v8, %s1234_s29  ;;  %s802_s24 = sshll.u32 %s798_s10, 4  ;;  %s803_s24 = int_to_ptr.hbm [resolvable:$true] %s802_s24 }
  0xbf   : > { %332 = vst.msk [vmem:[#allocation2 + $0x3] sm:$0x2] %vm331_vm2, %v312_v8  ;;  %s1166_s29 = sshra.s32 %s803_s24, 4  ;;  %s1167_s29 = int_to_ptr.hbm [resolvable:$true] %s1166_s29 }
  0xc0   : > { %338 = vst.msk [vmem:[#allocation2 + $0x6] sm:$0x4] %vm337_vm3, %v312_v8  ;;  %p1173_p9 = scmp.lt.s32.totalorder %s1167_s29, %s1562_s5 }
  0xc1   : > { %343 = vst.msk [vmem:[#allocation2 + $0x9] sm:$0x8] %vm342_vm4, %v312_v8 }
  0xc2   : > { %349 = vst.msk [vmem:[#allocation2 + $0xc] sm:$0x10] %vm348_vm5, %v312_v8 }
  0xc3   : > { %354 = vst.msk [vmem:[#allocation2 + $0xf] sm:$0x20] %vm353_vm6, %v312_v8 }
  0xc4   : > { %360 = vst.msk [vmem:[#allocation2 + $0x12] sm:$0x40] %vm359_vm7, %v312_v8 }
  0xc5   : > { %v314_v9 = vpop.f32.mrf.mxu0  ;;  %365 = vst.msk [vmem:[#allocation2 + $0x15] sm:$0x80] %vm364_vm8, %v312_v8 }
  0xc6   : > { %323 = vrot.lane.b32.xlu0 %v312_v8, %s1235_s14  ;;  %s1168_s14 = scalar_lea.hbm %s1167_s29, 8 }
  0xc7   : > { %p1169_p1 = scmp.ne.s32.totalorder %s1167_s29, %s1168_s14  ;;  %p1174_p10 = scmp.lt.s32.totalorder %s1172_s13, %s1168_s14 }
  0xc9   : > { %p1170_p4 = pnand %p1169_p1, %p1351_p3  ;;  %p1175_p2 = por %p1174_p10, %p1173_p9 }
  0xcb   : > { %p1171_p8 = pneg %p1170_p4 }
  0xcd   : > { %p1176_p11 = pnand %p1175_p2, %p1171_p8 }
 0x130   : > { %v328_v10 = vpop.permute.xlu1 %327  ;;  %v320_v11 = vpop.permute.xlu0 %319 }
 0x131   : > { %330 = vst.msk [vmem:[#allocation2 + $0x3] sm:$0x1] %vm316_vm1, %v328_v10 }
 0x132   : > { %335 = vst.msk [vmem:[#allocation2 + $0x6] sm:$0x2] %vm331_vm2, %v328_v10 }
 0x133   : > { %341 = vst.msk [vmem:[#allocation2 + $0x9] sm:$0x4] %vm337_vm3, %v328_v10 }
 0x134   : > { %346 = vst.msk [vmem:[#allocation2 + $0xc] sm:$0x8] %vm342_vm4, %v328_v10 }
 0x135   : > { %352 = vst.msk [vmem:[#allocation2 + $0xf] sm:$0x10] %vm348_vm5, %v328_v10 }
 0x136   : > { %357 = vst.msk [vmem:[#allocation2 + $0x12] sm:$0x20] %vm353_vm6, %v328_v10 }
 0x137   : > { %363 = vst.msk [vmem:[#allocation2 + $0x15] sm:$0x40] %vm359_vm7, %v328_v10 }
 0x138   : > { %368 = vst.msk [vmem:[#allocation2 + $0x18] sm:$0x80] %vm364_vm8, %v328_v10  ;;  %v324_v12 = vpop.permute.xlu0 %323 }
 0x139   : > { %322 = vst.msk [vmem:[#allocation2 + $0x1] sm:$0x1] %vm316_vm1, %v320_v11 }
 0x13a   : > { %333 = vst.msk [vmem:[#allocation2 + $0x4] sm:$0x2] %vm331_vm2, %v320_v11 }
 0x13b   : > { %339 = vst.msk [vmem:[#allocation2 + $0x7] sm:$0x4] %vm337_vm3, %v320_v11 }
 0x13c   : > { %344 = vst.msk [vmem:[#allocation2 + $0xa] sm:$0x8] %vm342_vm4, %v320_v11 }
 0x13d   : > { %350 = vst.msk [vmem:[#allocation2 + $0xd] sm:$0x10] %vm348_vm5, %v320_v11 }
 0x13e   : > { %355 = vst.msk [vmem:[#allocation2 + $0x10] sm:$0x20] %vm353_vm6, %v320_v11 }
 0x13f   : > { %361 = vst.msk [vmem:[#allocation2 + $0x13] sm:$0x40] %vm359_vm7, %v320_v11 }
 0x140   : > { %366 = vst.msk [vmem:[#allocation2 + $0x16] sm:$0x80] %vm364_vm8, %v320_v11 }
 0x141   : > { %326 = vst.msk [vmem:[#allocation2 + $0x2] sm:$0x1] %vm316_vm1, %v324_v12 }
 0x142   : > { %334 = vst.msk [vmem:[#allocation2 + $0x5] sm:$0x2] %vm331_vm2, %v324_v12 }
 0x143   : > { %340 = vst.msk [vmem:[#allocation2 + $0x8] sm:$0x4] %vm337_vm3, %v324_v12 }
 0x144   : > { %345 = vst.msk [vmem:[#allocation2 + $0xb] sm:$0x8] %vm342_vm4, %v324_v12 }
 0x145   : > { %351 = vst.msk [vmem:[#allocation2 + $0xe] sm:$0x10] %vm348_vm5, %v324_v12 }
 0x146   : > { %356 = vst.msk [vmem:[#allocation2 + $0x11] sm:$0x20] %vm353_vm6, %v324_v12 }
 0x147   : > { %362 = vst.msk [vmem:[#allocation2 + $0x14] sm:$0x40] %vm359_vm7, %v324_v12 }
 0x148   : > { %367 = vst.msk [vmem:[#allocation2 + $0x17] sm:$0x80] %vm364_vm8, %v324_v12 }
 0x149   : > { %v369_v13 = vld [vmem:[#allocation2] sm:$0xff] }
 0x14a   : > { %v373_v14 = vpack.c.bf16 %v369_v13, %v369_v13  ;;  %v377_v23 = vmul.f32 0.35355338, %v369_v13 }
 0x14b   : > { %v370_v15 = vld [vmem:[#allocation2 + $0x8] sm:$0xff] }
 0x14c   : > { %v390_v16 = vsel %vm385_vm9, %v373_v14, 0  ;;  %v374_v17 = vpack.c.bf16 %v370_v15, %v370_v15  ;;  %v522_v18 = vsel %vm521_vm10, %v373_v14, 0  ;;  %v378_v28 = vmul.f32 0.35355338, %v370_v15 }
 0x14d   : > { %399 = vmatpush.bf16.xpose.msra.mxu1 %v390_v16  ;;  %v371_v19 = vld [vmem:[#allocation2 + $0x10] sm:$0xff]  ;;  %v381_v31 = vpack.c.bf16 %v377_v23, %v377_v23 }
 0x14e   : > { %v409_v20 = vsel %vm385_vm9, %v374_v17, 0  ;;  %v375_v21 = vpack.c.bf16 %v371_v19, %v371_v19  ;;  %v540_v22 = vsel %vm521_vm10, %v374_v17, 0  ;;  %v379_v32 = vmul.f32 0.35355338, %v371_v19 }
 0x14f   : > { %418 = vmatpush.bf16.xpose.msra.mxu2 %v409_v20  ;;  %v372_v24 = vld [vmem:[#allocation2 + $0x18] sm:$0xff]  ;;  %v382_v34 = vpack.c.bf16 %v378_v28, %v378_v28 }
 0x150   : > { %v428_v25 = vsel %vm385_vm9, %v375_v21, 0  ;;  %v376_v26 = vpack.c.bf16 %v372_v24, %v372_v24  ;;  %v558_v27 = vsel %vm521_vm10, %v375_v21, 0  ;;  %v380_v33 = vmul.f32 0.35355338, %v372_v24 }
 0x151   : > { %437 = vmatpush.bf16.xpose.msra.mxu3 %v428_v25  ;;  %v383_v35 = vpack.c.bf16 %v379_v32, %v379_v32 }
 0x152   : > { %v447_v29 = vsel %vm385_vm9, %v376_v26, 0  ;;  %v576_v30 = vsel %vm521_vm10, %v376_v26, 0  ;;  %v384_v36 = vpack.c.bf16 %v380_v33, %v380_v33 }
 0x153   : > { %456 = vmatpush.bf16.xpose.msrb.mxu0 %v447_v29 }
 0x154   : > { %917 = vmatmul.msk.bf16.vlgmr.msra.gmra.mxu1 %vm385_vm9, %v381_v31 }
 0x155   : > { %531 = vmatpush.bf16.msrb.mxu1 %v522_v18 }
 0x156   : > { %918 = vmatmul.msk.bf16.vlgmr.msra.gmra.mxu2 %vm385_vm9, %v382_v34 }
 0x157   : > { %549 = vmatpush.bf16.msrb.mxu2 %v540_v22 }
 0x158   : > { %919 = vmatmul.msk.bf16.vlgmr.msra.gmra.mxu3 %vm385_vm9, %v383_v35 }
 0x159   : > { %567 = vmatpush.bf16.msrb.mxu3 %v558_v27 }
 0x15a   : > { %920 = vmatmul.msk.bf16.vlgmr.msrb.gmra.mxu0 %vm385_vm9, %v384_v36 }
 0x15b   : > { %585 = vmatpush.bf16.msra.mxu0 %v576_v30 }
 0x1d1   : > { %v401_v37 = vpop.f32.mrf.mxu1 }
 0x1d2   : > { %v466_v51 = vsel %vm463_vm11, -1e+20, %v401_v37 }
 0x1d3   : > { %v470_v53 = vsel %vm385_vm9, %v466_v51, -inf }
 0x1d7   : > { %v458_v39 = vpop.f32.mrf.mxu0 }
 0x1d8   : > { %v469_v40 = vsel %vm463_vm11, -1e+20, %v458_v39 }
 0x1d9   : > { %v479_v41 = vsel %vm385_vm9, %v469_v40, -inf  ;;  %v420_v42 = vpop.f32.mrf.mxu2  ;;  %v403_v43 = vpop.f32.mrf.mxu1 }
 0x1da   : > { %480 = vmax.xlane.f32.xlu0 %v479_v41  ;;  %v467_v44 = vsel %vm463_vm11, -1e+20, %v420_v42 }
 0x1db   : > { %v439_v45 = vpop.f32.mrf.mxu3  ;;  %v473_v46 = vsel %vm385_vm9, %v467_v44, -inf }
 0x1dc   : > { %v468_v47 = vsel %vm463_vm11, -1e+20, %v439_v45  ;;  %474 = vmax.xlane.f32.xlu1 %v473_v46 }
 0x1dd   : > { %v476_v48 = vsel %vm385_vm9, %v468_v47, -inf }
 0x1de   : > { %477 = vmax.xlane.f32.xlu2 %v476_v48 }
 0x1df   : > { %v460_v49 = vpop.f32.mrf.mxu0 }
 0x1e1   : > { %v422_v50 = vpop.f32.mrf.mxu2 }
 0x1e3   : > { %v441_v52 = vpop.f32.mrf.mxu3 }
 0x1e6   : > { %471 = vmax.xlane.f32.xlu2 %v470_v53 }
 0x24d   : > { %v481_v1 = vpop.xlane.xlu0 %480 }
 0x24e   : > { %v485_v3 = vsub.f32 %v469_v40, %v481_v1 }
 0x24f   : > { %v475_v55 = vpop.xlane.xlu1 %474 }
 0x250   : > { %v483_v58 = vsub.f32 %v467_v44, %v475_v55  ;;  %v492_v5 = vmul.f32 1.442695, %v485_v3 }
 0x251   : > { %v478_v54 = vpop.xlane.xlu2 %477 }
 0x252   : > { %v488_v60 = vmul.f32 1.442695, %v483_v58  ;;  %v484_v62 = vsub.f32 %v468_v47, %v478_v54 }
 0x254   : > { %v490_v0 = vmul.f32 1.442695, %v484_v62 }
 0x259   : > { %v472_v56 = vpop.xlane.xlu2 %471 }
 0x25a   : > { %v482_v57 = vsub.f32 %v466_v51, %v472_v56 }
 0x25c   : > { %v486_v59 = vmul.f32 1.442695, %v482_v57 }
 0x25e   : > { %1016 = vpow2.f32 %v486_v59 }
 0x25f   : > { %1018 = vpow2.f32 %v488_v60 }
 0x260   : > { %1020 = vpow2.f32 %v490_v0 }
 0x261   : > { %1022 = vpow2.f32 %v492_v5 }
 0x264   : > { %v1017_v61 = vpop.eup %1016 }
 0x265   : > { %v494_v63 = vsel %vm385_vm9, %v1017_v61, 0.0  ;;  %v1019_v2 = vpop.eup %1018 }
 0x266   : > { %495 = vadd.xlane.f32.xlu2 %v494_v63  ;;  %v497_v4 = vsel %vm385_vm9, %v1019_v2, 0.0  ;;  %v1021_v6 = vpop.eup %1020 }
 0x267   : > { %v500_v7 = vsel %vm385_vm9, %v1021_v6, 0.0  ;;  %v1023_v8 = vpop.eup %1022 }
 0x268   : > { %v503_v9 = vsel %vm385_vm9, %v1023_v8, 0.0 }
 0x26e   : > { %498 = vadd.xlane.f32.xlu2 %v497_v4 }
 0x276   : > { %501 = vadd.xlane.f32.xlu2 %v500_v7 }
 0x27e   : > { %504 = vadd.xlane.f32.xlu2 %v503_v9 }
 0x2d9   : > { %v496_v10 = vpop.xlane.xlu2 %495 }
 0x2da   : > { %1024 = vrcp.f32 %v496_v10 }
 0x2e0   : > { %v1025_v11 = vpop.eup %1024 }
 0x2e1   : > { %v510_v12 = vmul.f32 %v1025_v11, %v1017_v61  ;;  %v499_v13 = vpop.xlane.xlu2 %498 }
 0x2e2   : > { %1026 = vrcp.f32 %v499_v13  ;;  %v762_v13 = vld [vmem:[#allocation10 + $0x10] sm:$0xff] }
 0x2e3   : > { %v514_v14 = vpack.c.bf16 %v510_v12, %v510_v12 }
 0x2e5   : > { %921 = vmatmul.msk.bf16.vlgmr.msrb.gmra.mxu1 %vm385_vm9, %v514_v14  ;;  %v763_v14 = vld [vmem:[#allocation10 + $0x18] sm:$0xff] }
 0x2e8   : > { %v1027_v15 = vpop.eup %1026 }
 0x2e9   : > { %v511_v16 = vmul.f32 %v1027_v15, %v1019_v2  ;;  %v502_v17 = vpop.xlane.xlu2 %501  ;;  %v765_v15 = vpack.c.bf16 %v763_v14, %v762_v13 }
 0x2ea   : > { %1028 = vrcp.f32 %v502_v17 }
 0x2eb   : > { %v515_v18 = vpack.c.bf16 %v511_v16, %v511_v16  ;;  %779 = vmatpush.bf16.msra.mxu1 %v765_v15 }
 0x2ed   : > { %922 = vmatmul.msk.bf16.vlgmr.msrb.gmra.mxu2 %vm385_vm9, %v515_v18 }
 0x2f0   : > { %v1029_v19 = vpop.eup %1028 }
 0x2f1   : > { %v512_v20 = vmul.f32 %v1029_v19, %v1021_v6  ;;  %v505_v21 = vpop.xlane.xlu2 %504  ;;  %v760_v19 = vld [vmem:[#allocation10] sm:$0xff] }
 0x2f2   : > { %1030 = vrcp.f32 %v505_v21 }
 0x2f3   : > { %v516_v22 = vpack.c.bf16 %v512_v20, %v512_v20  ;;  %v761_v20 = vld [vmem:[#allocation10 + $0x8] sm:$0xff] }
 0x2f4   : > { %v764_v21 = vpack.c.bf16 %v761_v20, %v760_v19 }
 0x2f5   : > { %923 = vmatmul.msk.bf16.vlgmr.msrb.gmra.mxu3 %vm385_vm9, %v516_v22 }
 0x2f6   : > { %780 = vmatpush.bf16.msra.mxu1 %v764_v21 }
 0x2f8   : > { %v1031_v23 = vpop.eup %1030 }
 0x2f9   : > { %v513_v24 = vmul.f32 %v1031_v23, %v1023_v8 }
 0x2fb   : > { %v517_v25 = vpack.c.bf16 %v513_v24, %v513_v24 }
 0x2fd   : > { %924 = vmatmul.msk.bf16.vlgmr.msra.gmra.mxu0 %vm385_vm9, %v517_v25 }
 0x362   : > { %v533_v26 = vpop.f32.mrf.mxu1 }
 0x363   : > { %591 = vst.msk [vmem:[#allocation2] sm:$0xff] %vm385_vm9, %v533_v26 }
 0x36a   : > { %v535_v27 = vpop.f32.mrf.mxu1  ;;  %v620_v28 = vld [vmem:[#allocation2 + $0x5] sm:$0x1]  ;;  %v604_v29 = vld [vmem:[#allocation2 + $0x2] sm:$0x1]  ;;  %v597_v30 = vld [vmem:[#allocation2 + $0x1] sm:$0x1] }
 0x36b   : > { %622 = vrot.lane.b32.xlu1 %v620_v28, %s1236_s16  ;;  %606 = vrot.lane.b32.xlu0 %v604_v29, %s1237_s17  ;;  %v595_v31 = vld [vmem:[#allocation2] sm:$0x1]  ;;  %v618_v32 = vld [vmem:[#allocation2 + $0x4] sm:$0x1]  ;;  %v611_v48 = vld [vmem:[#allocation2 + $0x3] sm:$0x1] }
 0x36c   : > { %599 = vrot.lane.b32.xlu2 %v597_v30, %s1236_s16  ;;  %596 = vst.msk [vmem:[#allocation3] sm:$0x1] %vm316_vm1, %v595_v31  ;;  %v632_v49 = vld [vmem:[#allocation2 + $0x7] sm:$0x1]  ;;  %v626_v50 = vld [vmem:[#allocation2 + $0x6] sm:$0x1] }
 0x36d   : > { %619 = vst.msk [vmem:[#allocation3 + $0x1] sm:$0x1] %vm316_vm1, %v618_v32 }
 0x370   : > { %v551_v33 = vpop.f32.mrf.mxu2 }
 0x371   : > { %592 = vst.msk [vmem:[#allocation2 + $0x8] sm:$0xff] %vm385_vm9, %v551_v33 }
 0x378   : > { %v553_v34 = vpop.f32.mrf.mxu2  ;;  %v569_v35 = vpop.f32.mrf.mxu3  ;;  %v658_v37 = vld [vmem:[#allocation2 + $0xc] sm:$0x1]  ;;  %v638_v38 = vld [vmem:[#allocation2 + $0x8] sm:$0x1]  ;;  %v640_v52 = vld [vmem:[#allocation2 + $0x9] sm:$0x1] }
 0x379   : > { %593 = vst.msk [vmem:[#allocation2 + $0x10] sm:$0xff] %vm385_vm9, %v569_v35  ;;  %v646_v54 = vld [vmem:[#allocation2 + $0xa] sm:$0x1]  ;;  %v660_v56 = vld [vmem:[#allocation2 + $0xd] sm:$0x1] }
 0x37a   : > { %v587_v36 = vpop.f32.mrf.mxu0  ;;  %659 = vst.msk [vmem:[#allocation3 + $0x3] sm:$0x1] %vm316_vm1, %v658_v37  ;;  %v666_v58 = vld [vmem:[#allocation2 + $0xe] sm:$0x1]  ;;  %v672_v60 = vld [vmem:[#allocation2 + $0xf] sm:$0x1] }
 0x37b   : > { %594 = vst.msk [vmem:[#allocation2 + $0x18] sm:$0xff] %vm385_vm9, %v587_v36  ;;  %v652_v62 = vld [vmem:[#allocation2 + $0xb] sm:$0x1]  ;;  %v1015_v34 = vld [vmem:[%s1561_s4] ss:$0 sm:$0xff] }
 0x37c   : > { %639 = vst.msk [vmem:[#allocation3 + $0x2] sm:$0x1] %vm316_vm1, %v638_v38 }
 0x380   : > { %v571_v39 = vpop.f32.mrf.mxu3  ;;  %v678_v46 = vld [vmem:[#allocation2 + $0x10] sm:$0x1]  ;;  %v698_v47 = vld [vmem:[#allocation2 + $0x14] sm:$0x1]  ;;  %v680_v51 = vld [vmem:[#allocation2 + $0x11] sm:$0x1] }
 0x381   : > { %679 = vst.msk [vmem:[#allocation3 + $0x4] sm:$0x1] %vm316_vm1, %v678_v46  ;;  %v700_v55 = vld [vmem:[#allocation2 + $0x15] sm:$0x1]  ;;  %v706_v57 = vld [vmem:[#allocation2 + $0x16] sm:$0x1] }
 0x382   : > { %v589_v40 = vpop.f32.mrf.mxu0  ;;  %v740_v41 = vld [vmem:[#allocation2 + $0x1d] sm:$0x1]  ;;  %v726_v42 = vld [vmem:[#allocation2 + $0x1a] sm:$0x1]  ;;  %v720_v43 = vld [vmem:[#allocation2 + $0x19] sm:$0x1] }
 0x383   : > { %742 = vrot.lane.b32.xlu1 %v740_v41, %s1236_s16  ;;  %728 = vrot.lane.b32.xlu0 %v726_v42, %s1237_s17  ;;  %v718_v44 = vld [vmem:[#allocation2 + $0x18] sm:$0x1]  ;;  %v738_v45 = vld [vmem:[#allocation2 + $0x1c] sm:$0x1]  ;;  %699 = vst.msk [vmem:[#allocation3 + $0x5] sm:$0x1] %vm316_vm1, %v698_v47 }
 0x384   : > { %722 = vrot.lane.b32.xlu2 %v720_v43, %s1236_s16  ;;  %719 = vst.msk [vmem:[#allocation3 + $0x6] sm:$0x1] %vm316_vm1, %v718_v44  ;;  %v746_v53 = vld [vmem:[#allocation2 + $0x1e] sm:$0x1]  ;;  %v686_v59 = vld [vmem:[#allocation2 + $0x12] sm:$0x1] }
 0x385   : > { %739 = vst.msk [vmem:[#allocation3 + $0x7] sm:$0x1] %vm316_vm1, %v738_v45  ;;  %v692_v61 = vld [vmem:[#allocation2 + $0x13] sm:$0x1]  ;;  %v732_v63 = vld [vmem:[#allocation2 + $0x1b] sm:$0x1] }
 0x386   : > { %v752_v0 = vld [vmem:[#allocation2 + $0x1f] sm:$0x1]  ;;  %v712_v1 = vld [vmem:[#allocation2 + $0x17] sm:$0x1] }
 0x38b   : > { %613 = vrot.lane.b32.xlu1 %v611_v48, %s1238_s23  ;;  %634 = vrot.lane.b32.xlu0 %v632_v49, %s1238_s23 }
 0x38c   : > { %628 = vrot.lane.b32.xlu2 %v626_v50, %s1237_s17 }
 0x393   : > { %682 = vrot.lane.b32.xlu1 %v680_v51, %s1236_s16  ;;  %642 = vrot.lane.b32.xlu0 %v640_v52, %s1236_s16 }
 0x394   : > { %748 = vrot.lane.b32.xlu2 %v746_v53, %s1237_s17 }
 0x39b   : > { %648 = vrot.lane.b32.xlu1 %v646_v54, %s1237_s17  ;;  %702 = vrot.lane.b32.xlu0 %v700_v55, %s1236_s16 }
 0x39c   : > { %662 = vrot.lane.b32.xlu2 %v660_v56, %s1236_s16 }
 0x3a3   : > { %708 = vrot.lane.b32.xlu1 %v706_v57, %s1237_s17  ;;  %668 = vrot.lane.b32.xlu0 %v666_v58, %s1237_s17 }
 0x3a4   : > { %688 = vrot.lane.b32.xlu2 %v686_v59, %s1237_s17 }
 0x3ab   : > { %674 = vrot.lane.b32.xlu1 %v672_v60, %s1238_s23  ;;  %694 = vrot.lane.b32.xlu0 %v692_v61, %s1238_s23 }
 0x3ac   : > { %654 = vrot.lane.b32.xlu2 %v652_v62, %s1238_s23 }
 0x3b3   : > { %734 = vrot.lane.b32.xlu1 %v732_v63, %s1238_s23  ;;  %754 = vrot.lane.b32.xlu0 %v752_v0, %s1238_s23 }
 0x3b4   : > { %714 = vrot.lane.b32.xlu2 %v712_v1, %s1238_s23 }
 0x3c6   : > { %v600_v2 = vpop.permute.xlu2 %599 }
 0x3c7   : > { %603 = vst.msk [vmem:[#allocation3] sm:$0x1] %vm602_vm12, %v600_v2 }
 0x3dd   : > { %v623_v3 = vpop.permute.xlu1 %622  ;;  %v607_v4 = vpop.permute.xlu0 %606 }
 0x3de   : > { %625 = vst.msk [vmem:[#allocation3 + $0x1] sm:$0x1] %vm602_vm12, %v623_v3  ;;  %v723_v5 = vpop.permute.xlu2 %722 }
 0x3df   : > { %610 = vst.msk [vmem:[#allocation3] sm:$0x1] %vm609_vm13, %v607_v4 }
 0x3e0   : > { %725 = vst.msk [vmem:[#allocation3 + $0x6] sm:$0x1] %vm602_vm12, %v723_v5 }
 0x3e6   : > { %v629_v6 = vpop.permute.xlu2 %628 }
 0x3e7   : > { %631 = vst.msk [vmem:[#allocation3 + $0x1] sm:$0x1] %vm609_vm13, %v629_v6 }
 0x3ee   : > { %v749_v7 = vpop.permute.xlu2 %748 }
 0x3f5   : > { %v743_v8 = vpop.permute.xlu1 %742  ;;  %v729_v9 = vpop.permute.xlu0 %728 }
 0x3f6   : > { %745 = vst.msk [vmem:[#allocation3 + $0x7] sm:$0x1] %vm602_vm12, %v743_v8  ;;  %v663_v10 = vpop.permute.xlu2 %662 }
 0x3f7   : > { %751 = vst.msk [vmem:[#allocation3 + $0x7] sm:$0x1] %vm609_vm13, %v749_v7 }
 0x3f8   : > { %731 = vst.msk [vmem:[#allocation3 + $0x6] sm:$0x1] %vm609_vm13, %v729_v9 }
 0x3f9   : > { %665 = vst.msk [vmem:[#allocation3 + $0x3] sm:$0x1] %vm602_vm12, %v663_v10 }
 0x3fd   : > { %v614_v11 = vpop.permute.xlu1 %613  ;;  %v635_v12 = vpop.permute.xlu0 %634 }
 0x3fe   : > { %617 = vst.msk [vmem:[#allocation3] sm:$0x1] %vm616_vm14, %v614_v11  ;;  %v689_v16 = vpop.permute.xlu2 %688 }
 0x3ff   : > { %637 = vst.msk [vmem:[#allocation3 + $0x1] sm:$0x1] %vm616_vm14, %v635_v12 }
 0x405   : > { %v683_v17 = vpop.permute.xlu1 %682  ;;  %v643_v18 = vpop.permute.xlu0 %642 }
 0x406   : > { %685 = vst.msk [vmem:[#allocation3 + $0x4] sm:$0x1] %vm602_vm12, %v683_v17  ;;  %v655_v22 = vpop.permute.xlu2 %654 }
 0x407   : > { %691 = vst.msk [vmem:[#allocation3 + $0x4] sm:$0x1] %vm609_vm13, %v689_v16 }
 0x408   : > { %645 = vst.msk [vmem:[#allocation3 + $0x2] sm:$0x1] %vm602_vm12, %v643_v18 }
 0x40d   : > { %v649_v23 = vpop.permute.xlu1 %648  ;;  %v703_v24 = vpop.permute.xlu0 %702 }
 0x40e   : > { %651 = vst.msk [vmem:[#allocation3 + $0x2] sm:$0x1] %vm609_vm13, %v649_v23  ;;  %v715_v27 = vpop.permute.xlu2 %714 }
 0x40f   : > { %657 = vst.msk [vmem:[#allocation3 + $0x2] sm:$0x1] %vm616_vm14, %v655_v22 }
 0x410   : > { %705 = vst.msk [vmem:[#allocation3 + $0x5] sm:$0x1] %vm602_vm12, %v703_v24 }
 0x415   : > { %v709_v25 = vpop.permute.xlu1 %708  ;;  %v669_v26 = vpop.permute.xlu0 %668 }
 0x416   : > { %711 = vst.msk [vmem:[#allocation3 + $0x5] sm:$0x1] %vm609_vm13, %v709_v25 }
 0x417   : > { %717 = vst.msk [vmem:[#allocation3 + $0x5] sm:$0x1] %vm616_vm14, %v715_v27 }
 0x418   : > { %671 = vst.msk [vmem:[#allocation3 + $0x3] sm:$0x1] %vm609_vm13, %v669_v26 }
 0x41d   : > { %v675_v28 = vpop.permute.xlu1 %674  ;;  %v695_v29 = vpop.permute.xlu0 %694 }
 0x41e   : > { %677 = vst.msk [vmem:[#allocation3 + $0x3] sm:$0x1] %vm616_vm14, %v675_v28 }
 0x41f   : > { %697 = vst.msk [vmem:[#allocation3 + $0x4] sm:$0x1] %vm616_vm14, %v695_v29 }
 0x425   : > { %v735_v30 = vpop.permute.xlu1 %734  ;;  %v755_v31 = vpop.permute.xlu0 %754 }
 0x426   : > { %737 = vst.msk [vmem:[#allocation3 + $0x6] sm:$0x1] %vm616_vm14, %v735_v30 }
 0x427   : > { %757 = vst.msk [vmem:[#allocation3 + $0x7] sm:$0x1] %vm616_vm14, %v755_v31 }
 0x42e   : > { %v758_v32 = vld [vmem:[#allocation3] sm:$0xff] }
 0x42f   : > { %v759_v33 = vpack.c.bf16 %v758_v32, %v758_v32 }
 0x431   : > { %925 = vmatmul.msk.bf16.vlgmr.msra.gmra.mxu1 %vm299_vm0, %v759_v33 }
 0x4ae   : > { %v782_v35 = vpop.f32.mrf.mxu1 }
 0x4af   : > { %v783_v36 = vadd.f32 %v1015_v34, %v782_v35 }
 0x4b1   : > { %786 = vst.msk [vmem:[%s289_s15] sm:$0xff] %vm299_vm0, %v783_v36 }
 0x4b2   : > { %1179 = shalt.err (!%p1176_p11)
}
 0x4b3   : > { %944 = dma.vmem_to_hbm [thread:$0]  (%p1351_p3), %s801_s26, 128, %s803_s24, %s788_s22  }
 0x4b6   : > { %v784_v37 = vpop.f32.mrf.mxu1 }
 0x4b7 PF: > { %s814_s8 = sand.u32 1, %s1214_s18   ;;  %p1569_p12 = scmp.ge.s32.totalorder %s1226_s21, 2 }
 0x4b8   : > { %s815_s30 = scalar_lea.sflag [#allocation6], %s814_s8 }
 0x4b9   : > { %p961_p13 = pnand %p1569_p12, %p1304_p6 }
 0x4bb   : > { %p962_p0 = pneg %p961_p13 }
 0x4bd   : > { %1209 = dma.done.wait (%p962_p0), %s815_s30, 128  }
 0x4be   : > { %1211 = vsyncadd (%p962_p0), %s815_s30, 4294967168  ;;  %p20_p5 = scmp.ge.s32.totalorder %s1338_s27, 4   ;;  %s1570_s18 = smov %s1218_s19 }
 0x4bf   : > { %s1571_s19 = smov %s1222_s20  ;;  %s1572_s20 = smov %s1347_s6 }
 0x4c0   : > { %s1573_s21 = smov %s1338_s27  ;;  %22 = sbr.rel (!%p20_p5) target bundleno = 7 (0x7), region = 100 }
 0x4c5   :  { %821 = vsyncpa [#allocation5], 1 }
 0x4c6   :  { %823 = vsyncpa [#allocation5 + $0x1], 1 }
 0x4c7   :  { %824 = vsyncpa [#allocation8], 1 }
 0x4c8   :  { %825 = vsyncpa [#allocation11], 1 }
 0x4c9   :  { %826 = vsyncpa [#allocation6], 1 }
 0x4ca   :  { %828 = vsyncpa [#allocation6 + $0x1], 1 }

</bundles_post_ra>
